<compile_context>
chip_gen: v7x
topology: tpu7x:2x2x1
jax: 0.10.0
libtpu: 0.0.40
codegen_flags: <defaults>
</compile_context>

<pallas_src>
import functools

import jax
import jax.numpy as jnp
from jax.experimental import pallas as pl
from jax.experimental.pallas import tpu as pltpu


LATENT_DIM = 5
LATENT_PAD = 8          # latent padded to a full sublane group (zero pad is inert)
HIDDEN_DIM = 64
LANE = 128


def _round_up(x, m):
    return (x + m - 1) // m * m


def _default_batch_tile():
    """TB = 128 on v5e (128-row MXU), 256 on v6e/v7x (256-row MXU)."""
    try:
        kind = jax.devices()[0].device_kind.lower()
    except Exception:
        return 128
    return 128 if "v5" in kind else 256


# ----------------------------------------------------------------------------
# Kernel
# ----------------------------------------------------------------------------
def _vae_kernel(x_ref, eps_ref,
                w1_ref, b1_ref, w2_ref, b2_ref,
                w3_ref, b3_ref, w4_ref, b4_ref,
                out_ref):
    """One batch tile of the full VAE forward.

    out_ref is a lane-dense (TB, OUT_W) slab laid out as
      [ recon (input_dim) | mu (LATENT_PAD) | logvar (LATENT_PAD) | zero pad ].
    """
    x = x_ref[...]

    # encode: h = relu(x @ W1 + b1)
    h = jnp.dot(x, w1_ref[...], preferred_element_type=jnp.float32) + b1_ref[...]
    h = jnp.maximum(h, 0.0)

    # fused latent heads: one MXU pass yields [mu | logvar] (padded to 8 each)
    stats = jnp.dot(h, w2_ref[...], preferred_element_type=jnp.float32) + b2_ref[...]
    mu = stats[:, :LATENT_PAD]              # static slices: free
    logvar = stats[:, LATENT_PAD:]

    # reparameterize: z = mu + eps * exp(0.5 * logvar)
    z = mu + eps_ref[...] * jnp.exp(0.5 * logvar)

    # decode: recon = sigmoid(relu(z @ W3 + b3) @ W4 + b4)
    h2 = jnp.dot(z, w3_ref[...], preferred_element_type=jnp.float32) + b3_ref[...]
    h2 = jnp.maximum(h2, 0.0)
    logits = jnp.dot(h2, w4_ref[...], preferred_element_type=jnp.float32) + b4_ref[...]
    recon = jax.nn.sigmoid(logits)

    # single lane-dense store: one wide unmasked store instead of three masked
    # narrow (<128-lane) ones.
    tb = out_ref.shape[0]
    pad = out_ref.shape[1] - (recon.shape[1] + 2 * LATENT_PAD)
    pieces = [recon, mu, logvar]
    if pad > 0:
        pieces.append(jnp.zeros((tb, pad), jnp.float32))
    out_ref[...] = jnp.concatenate(pieces, axis=-1)


# ----------------------------------------------------------------------------
# Wrapper
# ----------------------------------------------------------------------------
@functools.partial(jax.jit, static_argnames=("tb",))
def vae_forward(x, packed, eps_pad, *, tb=128):
    """Runs the VAE forward pass in a single batch-tiled Pallas kernel.

    x:        (B, input_dim) float32
    packed:   dict from pack_params() (fused/padded weights, transposed to (in, out))
    eps_pad:  (B, LATENT_PAD) float32, first LATENT_DIM cols = N(0,1), rest zero
    Returns (recon, mu, logvar) matching the PyTorch module.
    """
    B, input_dim = x.shape
    out_w = max(LANE, _round_up(input_dim + 2 * LATENT_PAD, LANE))

    tb = min(tb, B)
    if B % tb != 0:
        tb = B                     # small / ragged batches: single block
    grid = B // tb

    weights = (packed["w1"], packed["b1"], packed["w2"], packed["b2"],
               packed["w3"], packed["b3"], packed["w4"], packed["b4"])

    in_specs = [
        pl.BlockSpec((tb, input_dim), lambda i: (i, 0)),     # x: batch-tiled
        pl.BlockSpec((tb, LATENT_PAD), lambda i: (i, 0)),    # eps: batch-tiled
    ] + [
        pl.BlockSpec(p.shape, lambda i: (0, 0)) for p in weights   # resident
    ]
    out_specs = pl.BlockSpec((tb, out_w), lambda i: (i, 0))

    flops = 2 * B * (input_dim * HIDDEN_DIM
                     + HIDDEN_DIM * 2 * LATENT_PAD
                     + LATENT_PAD * HIDDEN_DIM
                     + HIDDEN_DIM * input_dim)
    transcendentals = B * (LATENT_PAD + input_dim)           # exp + sigmoid
    bytes_accessed = 4 * (x.size + eps_pad.size
                          + sum(int(p.size) for p in weights)
                          + B * out_w)

    slab = pl.pallas_call(
        _vae_kernel,
        out_shape=jax.ShapeDtypeStruct((B, out_w), jnp.float32),
        grid=(grid,),
        in_specs=in_specs,
        out_specs=out_specs,
        compiler_params=pltpu.CompilerParams(
            dimension_semantics=("parallel",)),              # megacore on v7x
        cost_estimate=pl.CostEstimate(
            flops=flops, transcendentals=transcendentals,
            bytes_accessed=bytes_accessed),
    )(x, eps_pad, *weights)

    recon = slab[:, :input_dim]
    mu = slab[:, input_dim:input_dim + LATENT_DIM]
    logvar = slab[:, input_dim + LATENT_PAD:input_dim + LATENT_PAD + LATENT_DIM]
    return recon, mu, logvar


# ----------------------------------------------------------------------------
# Parameter construction / packing
# ----------------------------------------------------------------------------
def init_params(key, input_dim, latent_dim=LATENT_DIM, hidden=HIDDEN_DIM):
    """nn.Linear-style init, weights stored transposed: (fan_in, fan_out)."""
    def linear(k, fan_in, fan_out):
        kw, kb = jax.random.split(k)
        bound = 1.0 / jnp.sqrt(fan_in)
        w = jax.random.uniform(kw, (fan_in, fan_out), jnp.float32, -bound, bound)
        b = jax.random.uniform(kb, (1, fan_out), jnp.float32, -bound, bound)
        return w, b

    k1, k2, k3, k4, k5 = jax.random.split(key, 5)
    w1, b1 = linear(k1, input_dim, hidden)
    w2m, b2m = linear(k2, hidden, latent_dim)
    w2v, b2v = linear(k3, hidden, latent_dim)
    w3, b3 = linear(k4, latent_dim, hidden)
    w4, b4 = linear(k5, hidden, input_dim)
    return {
        "w1": w1, "b1": b1,
        "w2_mean": w2m, "b2_mean": b2m,
        "w2_logvar": w2v, "b2_logvar": b2v,
        "w3": w3, "b3": b3,
        "w4": w4, "b4": b4,
    }


def pack_params(params):
    """Fuse mean/logvar heads and zero-pad the latent dim 5 -> LATENT_PAD."""
    hidden = params["w1"].shape[1]

    w2 = jnp.zeros((hidden, 2 * LATENT_PAD), jnp.float32)
    w2 = w2.at[:, :LATENT_DIM].set(params["w2_mean"])
    w2 = w2.at[:, LATENT_PAD:LATENT_PAD + LATENT_DIM].set(params["w2_logvar"])

    b2 = jnp.zeros((1, 2 * LATENT_PAD), jnp.float32)
    b2 = b2.at[:, :LATENT_DIM].set(params["b2_mean"])
    b2 = b2.at[:, LATENT_PAD:LATENT_PAD + LATENT_DIM].set(params["b2_logvar"])

    w3 = jnp.zeros((LATENT_PAD, hidden), jnp.float32)
    w3 = w3.at[:LATENT_DIM, :].set(params["w3"])

    return {
        "w1": params["w1"], "b1": params["b1"],
        "w2": w2, "b2": b2,
        "w3": w3, "b3": params["b3"],
        "w4": params["w4"], "b4": params["b4"],
    }


def pad_eps(eps):
    """Zero-pad eps (B, 5) -> (B, LATENT_PAD)."""
    B = eps.shape[0]
    out = jnp.zeros((B, LATENT_PAD), eps.dtype)
    return out.at[:, :LATENT_DIM].set(eps)


def vae_forward_ref(x, params, eps):
    """Pure-JAX reference (same math as the PyTorch module)."""
    h = jnp.maximum(x @ params["w1"] + params["b1"], 0.0)
    mu = h @ params["w2_mean"] + params["b2_mean"]
    logvar = h @ params["w2_logvar"] + params["b2_logvar"]
    z = mu + eps * jnp.exp(0.5 * logvar)
    h2 = jnp.maximum(z @ params["w3"] + params["b3"], 0.0)
    recon = jax.nn.sigmoid(h2 @ params["w4"] + params["b4"])
    return recon, mu, logvar


if __name__ == "__main__":
    key = jax.random.PRNGKey(0)
    k_params, k_x, k_eps = jax.random.split(key, 3)

    batch = 256
    input_dim = 16

    params = init_params(k_params, input_dim)
    packed = pack_params(params)

    x = jax.random.normal(k_x, (batch, input_dim), jnp.float32)
    eps = jax.random.normal(k_eps, (batch, LATENT_DIM), jnp.float32)
    eps_p = pad_eps(eps)

    tb = _default_batch_tile()
    recon, mu, logvar = vae_forward(x, packed, eps_p, tb=tb)
    jax.block_until_ready((recon, mu, logvar))

    # sanity check against the pure-JAX reference
    recon_r, mu_r, logvar_r = vae_forward_ref(x, params, eps)
    assert recon.shape == (batch, input_dim)
    assert mu.shape == (batch, LATENT_DIM)
    assert logvar.shape == (batch, LATENT_DIM)
    assert jnp.allclose(recon, recon_r, atol=1e-5, rtol=1e-5)
    assert jnp.allclose(mu, mu_r, atol=1e-5, rtol=1e-5)
    assert jnp.allclose(logvar, logvar_r, atol=1e-5, rtol=1e-5)

    print("KERNEL_OK")
</pallas_src>

<mosaic_0001>
module attributes {stable_mosaic.version = 11 : i64} {
  func.func @_vae_kernel(%arg0: i32, %arg1: memref<256x16xf32, #tpu.memory_space<vmem>>, %arg2: memref<256x8xf32, #tpu.memory_space<vmem>>, %arg3: memref<16x64xf32, #tpu.memory_space<vmem>>, %arg4: memref<1x64xf32, #tpu.memory_space<vmem>>, %arg5: memref<64x16xf32, #tpu.memory_space<vmem>>, %arg6: memref<1x16xf32, #tpu.memory_space<vmem>>, %arg7: memref<8x64xf32, #tpu.memory_space<vmem>>, %arg8: memref<1x64xf32, #tpu.memory_space<vmem>>, %arg9: memref<64x16xf32, #tpu.memory_space<vmem>>, %arg10: memref<1x16xf32, #tpu.memory_space<vmem>>, %arg11: memref<256x128xf32, #tpu.memory_space<vmem>>) attributes {dimension_semantics = [#tpu.dimension_semantics<parallel>], iteration_bounds = array<i64: 1>, scalar_prefetch = 0 : i64, scratch_operands = 0 : i64, tpu.core_type = #tpu.core_type<tc>, window_params = [{transform_indices = @transform_0, window_bounds = array<i64: 256, 16>}, {transform_indices = @transform_1, window_bounds = array<i64: 256, 8>}, {pipeline_mode = #tpu.pipeline_mode<synchronous>, transform_indices = @transform_2, window_bounds = array<i64: 16, 64>}, {pipeline_mode = #tpu.pipeline_mode<synchronous>, transform_indices = @transform_3, window_bounds = array<i64: 1, 64>}, {pipeline_mode = #tpu.pipeline_mode<synchronous>, transform_indices = @transform_4, window_bounds = array<i64: 64, 16>}, {pipeline_mode = #tpu.pipeline_mode<synchronous>, transform_indices = @transform_5, window_bounds = array<i64: 1, 16>}, {pipeline_mode = #tpu.pipeline_mode<synchronous>, transform_indices = @transform_6, window_bounds = array<i64: 8, 64>}, {pipeline_mode = #tpu.pipeline_mode<synchronous>, transform_indices = @transform_7, window_bounds = array<i64: 1, 64>}, {pipeline_mode = #tpu.pipeline_mode<synchronous>, transform_indices = @transform_8, window_bounds = array<i64: 64, 16>}, {pipeline_mode = #tpu.pipeline_mode<synchronous>, transform_indices = @transform_9, window_bounds = array<i64: 1, 16>}, {transform_indices = @transform_10, window_bounds = array<i64: 256, 128>}]} {
    %c0 = arith.constant 0 : index
    %c0_0 = arith.constant 0 : index
    %0 = vector.load %arg1[%c0, %c0_0] : memref<256x16xf32, #tpu.memory_space<vmem>>, vector<256x16xf32>
    %c0_1 = arith.constant 0 : index
    %c0_2 = arith.constant 0 : index
    %1 = vector.load %arg3[%c0_1, %c0_2] : memref<16x64xf32, #tpu.memory_space<vmem>>, vector<16x64xf32>
    %cst = arith.constant dense<0.000000e+00> : vector<256x64xf32>
    %2 = tpu.matmul %0, %1, %cst {dimension_numbers = #tpu.dot_dimension_numbers<[1], [0], [0], [1], [0, 0, 1, 1], [], []>} : vector<256x16xf32>, vector<16x64xf32>, vector<256x64xf32> -> vector<256x64xf32>
    %c0_3 = arith.constant 0 : index
    %c0_4 = arith.constant 0 : index
    %3 = vector.load %arg4[%c0_3, %c0_4] : memref<1x64xf32, #tpu.memory_space<vmem>>, vector<1x64xf32>
    %4 = vector.broadcast %3 : vector<1x64xf32> to vector<256x64xf32>
    %5 = arith.addf %2, %4 : vector<256x64xf32>
    %cst_5 = arith.constant 0.000000e+00 : f32
    %6 = vector.broadcast %cst_5 : f32 to vector<256x64xf32>
    %7 = arith.maximumf %5, %6 : vector<256x64xf32>
    %c0_6 = arith.constant 0 : index
    %c0_7 = arith.constant 0 : index
    %8 = vector.load %arg5[%c0_6, %c0_7] : memref<64x16xf32, #tpu.memory_space<vmem>>, vector<64x16xf32>
    %cst_8 = arith.constant dense<0.000000e+00> : vector<256x16xf32>
    %9 = tpu.matmul %7, %8, %cst_8 {dimension_numbers = #tpu.dot_dimension_numbers<[1], [0], [0], [1], [0, 0, 1, 1], [], []>} : vector<256x64xf32>, vector<64x16xf32>, vector<256x16xf32> -> vector<256x16xf32>
    %c0_9 = arith.constant 0 : index
    %c0_10 = arith.constant 0 : index
    %10 = vector.load %arg6[%c0_9, %c0_10] : memref<1x16xf32, #tpu.memory_space<vmem>>, vector<1x16xf32>
    %11 = vector.broadcast %10 : vector<1x16xf32> to vector<256x16xf32>
    %12 = arith.addf %9, %11 : vector<256x16xf32>
    %13 = vector.extract_strided_slice %12 {offsets = [0, 0], sizes = [256, 8], strides = [1, 1]} : vector<256x16xf32> to vector<256x8xf32>
    %14 = vector.extract_strided_slice %12 {offsets = [0, 8], sizes = [256, 8], strides = [1, 1]} : vector<256x16xf32> to vector<256x8xf32>
    %c0_11 = arith.constant 0 : index
    %c0_12 = arith.constant 0 : index
    %15 = vector.load %arg2[%c0_11, %c0_12] : memref<256x8xf32, #tpu.memory_space<vmem>>, vector<256x8xf32>
    %cst_13 = arith.constant 5.000000e-01 : f32
    %16 = vector.broadcast %cst_13 : f32 to vector<256x8xf32>
    %17 = arith.mulf %16, %14 : vector<256x8xf32>
    %18 = math.exp %17 : vector<256x8xf32>
    %19 = arith.mulf %15, %18 : vector<256x8xf32>
    %20 = arith.addf %13, %19 : vector<256x8xf32>
    %c0_14 = arith.constant 0 : index
    %c0_15 = arith.constant 0 : index
    %21 = vector.load %arg7[%c0_14, %c0_15] : memref<8x64xf32, #tpu.memory_space<vmem>>, vector<8x64xf32>
    %cst_16 = arith.constant dense<0.000000e+00> : vector<256x64xf32>
    %22 = tpu.matmul %20, %21, %cst_16 {dimension_numbers = #tpu.dot_dimension_numbers<[1], [0], [0], [1], [0, 0, 1, 1], [], []>} : vector<256x8xf32>, vector<8x64xf32>, vector<256x64xf32> -> vector<256x64xf32>
    %c0_17 = arith.constant 0 : index
    %c0_18 = arith.constant 0 : index
    %23 = vector.load %arg8[%c0_17, %c0_18] : memref<1x64xf32, #tpu.memory_space<vmem>>, vector<1x64xf32>
    %24 = vector.broadcast %23 : vector<1x64xf32> to vector<256x64xf32>
    %25 = arith.addf %22, %24 : vector<256x64xf32>
    %cst_19 = arith.constant 0.000000e+00 : f32
    %26 = vector.broadcast %cst_19 : f32 to vector<256x64xf32>
    %27 = arith.maximumf %25, %26 : vector<256x64xf32>
    %c0_20 = arith.constant 0 : index
    %c0_21 = arith.constant 0 : index
    %28 = vector.load %arg9[%c0_20, %c0_21] : memref<64x16xf32, #tpu.memory_space<vmem>>, vector<64x16xf32>
    %cst_22 = arith.constant dense<0.000000e+00> : vector<256x16xf32>
    %29 = tpu.matmul %27, %28, %cst_22 {dimension_numbers = #tpu.dot_dimension_numbers<[1], [0], [0], [1], [0, 0, 1, 1], [], []>} : vector<256x64xf32>, vector<64x16xf32>, vector<256x16xf32> -> vector<256x16xf32>
    %c0_23 = arith.constant 0 : index
    %c0_24 = arith.constant 0 : index
    %30 = vector.load %arg10[%c0_23, %c0_24] : memref<1x16xf32, #tpu.memory_space<vmem>>, vector<1x16xf32>
    %31 = vector.broadcast %30 : vector<1x16xf32> to vector<256x16xf32>
    %32 = arith.addf %29, %31 : vector<256x16xf32>
    %33 = arith.negf %32 : vector<256x16xf32>
    %34 = math.exp %33 : vector<256x16xf32>
    %cst_25 = arith.constant 1.000000e+00 : f32
    %35 = vector.broadcast %cst_25 : f32 to vector<256x16xf32>
    %36 = arith.addf %35, %34 : vector<256x16xf32>
    %37 = arith.divf %35, %36 : vector<256x16xf32>
    %cst_26 = arith.constant 0.000000e+00 : f32
    %38 = vector.broadcast %cst_26 : f32 to vector<256x96xf32>
    %39 = tpu.concatenate %37, %13, %14, %38 in 1 : vector<256x16xf32>, vector<256x8xf32>, vector<256x8xf32>, vector<256x96xf32> -> vector<256x128xf32>
    %c0_27 = arith.constant 0 : index
    %c0_28 = arith.constant 0 : index
    %40 = vector.load %arg11[%c0_27, %c0_28] : memref<256x128xf32, #tpu.memory_space<vmem>>, vector<256x128xf32>
    tpu.vector_store %arg11[%c0_27, %c0_28], %39 {strides = array<i32>} : memref<256x128xf32, #tpu.memory_space<vmem>>, vector<256x128xf32>,
    return
  }
  func.func @transform_0(%arg0: i32) -> (i32, i32) {
    %c0_i32 = arith.constant 0 : i32
    %c0_i32_0 = arith.constant 0 : i32
    return %arg0, %c0_i32 : i32, i32
  }
  func.func @transform_1(%arg0: i32) -> (i32, i32) {
    %c0_i32 = arith.constant 0 : i32
    %c0_i32_0 = arith.constant 0 : i32
    return %arg0, %c0_i32 : i32, i32
  }
  func.func @transform_2(%arg0: i32) -> (i32, i32) {
    %c0_i32 = arith.constant 0 : i32
    %c0_i32_0 = arith.constant 0 : i32
    %c0_i32_1 = arith.constant 0 : i32
    return %c0_i32, %c0_i32_0 : i32, i32
  }
  func.func @transform_3(%arg0: i32) -> (i32, i32) {
    %c0_i32 = arith.constant 0 : i32
    %c0_i32_0 = arith.constant 0 : i32
    %c0_i32_1 = arith.constant 0 : i32
    return %c0_i32, %c0_i32_0 : i32, i32
  }
  func.func @transform_4(%arg0: i32) -> (i32, i32) {
    %c0_i32 = arith.constant 0 : i32
    %c0_i32_0 = arith.constant 0 : i32
    %c0_i32_1 = arith.constant 0 : i32
    return %c0_i32, %c0_i32_0 : i32, i32
  }
  func.func @transform_5(%arg0: i32) -> (i32, i32) {
    %c0_i32 = arith.constant 0 : i32
    %c0_i32_0 = arith.constant 0 : i32
    %c0_i32_1 = arith.constant 0 : i32
    return %c0_i32, %c0_i32_0 : i32, i32
  }
  func.func @transform_6(%arg0: i32) -> (i32, i32) {
    %c0_i32 = arith.constant 0 : i32
    %c0_i32_0 = arith.constant 0 : i32
    %c0_i32_1 = arith.constant 0 : i32
    return %c0_i32, %c0_i32_0 : i32, i32
  }
  func.func @transform_7(%arg0: i32) -> (i32, i32) {
    %c0_i32 = arith.constant 0 : i32
    %c0_i32_0 = arith.constant 0 : i32
    %c0_i32_1 = arith.constant 0 : i32
    return %c0_i32, %c0_i32_0 : i32, i32
  }
  func.func @transform_8(%arg0: i32) -> (i32, i32) {
    %c0_i32 = arith.constant 0 : i32
    %c0_i32_0 = arith.constant 0 : i32
    %c0_i32_1 = arith.constant 0 : i32
    return %c0_i32, %c0_i32_0 : i32, i32
  }
  func.func @transform_9(%arg0: i32) -> (i32, i32) {
    %c0_i32 = arith.constant 0 : i32
    %c0_i32_0 = arith.constant 0 : i32
    %c0_i32_1 = arith.constant 0 : i32
    return %c0_i32, %c0_i32_0 : i32, i32
  }
  func.func @transform_10(%arg0: i32) -> (i32, i32) {
    %c0_i32 = arith.constant 0 : i32
    %c0_i32_0 = arith.constant 0 : i32
    return %arg0, %c0_i32 : i32, i32
  }
}

</mosaic_0001>

<bundles_post_ra>
// kernel: vae_forward.1
= control target key start
LH: loop header
LB: loop body
LE: loop exit
PB: predicated region body
PF: predicated region fallthrough
CT: control target
= control target key end

     0   :  { %vm76_vm0 = vcmask 130048   ;;  %vm445_vm1 = vcmask 523264   ;;  %s3019_s13 = smov 16   ;;  %vm1095_vm2 = vcmask 64512   ;;  %vm2137_vm3 = vcmask 195584   ;;  %s4096_s2 = inlined_call_operand.vmem [shape: f32[16,64], index: 2, kind: input, shape index: {}]   ;;  %s4097_s0 = inlined_call_operand.vmem [shape: f32[256,16], index: 0, kind: input, shape index: {}]   ;;  %s4098_s4 = inlined_call_operand.vmem [shape: f32[64,16], index: 4, kind: input, shape index: {}]   ;;  %s4099_s3 = inlined_call_operand.vmem [shape: f32[1,64], index: 3, kind: input, shape index: {}]   ;;  %s4100_s5 = inlined_call_operand.vmem [shape: f32[1,16], index: 5, kind: input, shape index: {}]   ;;  %s4101_s6 = inlined_call_operand.vmem [shape: f32[8,64], index: 6, kind: input, shape index: {}]   ;;  %s4102_s1 = inlined_call_operand.vmem [shape: f32[256,8], index: 1, kind: input, shape index: {}]   ;;  %s4103_s8 = inlined_call_operand.vmem [shape: f32[64,16], index: 8, kind: input, shape index: {}]   ;;  %s4104_s7 = inlined_call_operand.vmem [shape: f32[1,64], index: 7, kind: input, shape index: {}]   ;;  %s4105_s9 = inlined_call_operand.vmem [shape: f32[1,16], index: 9, kind: input, shape index: {}]   ;;  %s4106_s10 = inlined_call_operand.vmem [shape: f32[256,128], index: 10, kind: output, shape index: {}]  }
   0x1   :  { %v67_v0 = vld [vmem:[%s4096_s2] sm:$0xff]  ;;  %v68_v1 = vld [vmem:[%s4096_s2 + $0x8] sm:$0xff]  ;;  %v37_v5 = vld [vmem:[%s4097_s0 + $0x10] sm:$0xff]  ;;  %vm2170_vm4 = vcmask 261120  }
   0x2   :  { %v35_v2 = vld [vmem:[%s4097_s0] sm:$0xff]  ;;  %v2780_v3 = vpack.c.bf16 %v68_v1, %v67_v0  ;;  %v36_v4 = vld [vmem:[%s4097_s0 + $0x8] sm:$0xff]  ;;  %v38_v6 = vld [vmem:[%s4097_s0 + $0x18] sm:$0xff] }
   0x3   :  { %2554 = vmatprep.mubr.msk.f32.mxu0 %vm76_vm0, %v35_v2  ;;  %v39_v7 = vld [vmem:[%s4097_s0 + $0x20] sm:$0xff]  ;;  %v431_v9 = vld [vmem:[%s4098_s4 + $0x8] sm:$0xff]  ;;  %v432_v12 = vld [vmem:[%s4098_s4 + $0x10] sm:$0xff] }
   0x4   :  { %2781 = vmatprep.subr.bf16.mxu0 %v2780_v3  ;;  %v430_v8 = vld [vmem:[%s4098_s4] sm:$0xff]  ;;  %v40_v10 = vld [vmem:[%s4097_s0 + $0x28] sm:$0xff]  ;;  %v433_v13 = vld [vmem:[%s4098_s4 + $0x18] sm:$0xff] }
   0x5   :  { %2783 = vmatpush3.bf16.msra.mxu0 %v2780_v3  ;;  %v2784_v11 = vpack.c.bf16 %v431_v9, %v430_v8  ;;  %v41_v14 = vld [vmem:[%s4097_s0 + $0x30] sm:$0xff]  ;;  %v2788_v15 = vpack.c.bf16 %v433_v13, %v432_v12  ;;  %v434_v16 = vld [vmem:[%s4098_s4 + $0x20] sm:$0xff]  ;;  %v435_v17 = vld [vmem:[%s4098_s4 + $0x28] sm:$0xff] }
   0x6   :  { %v42_v18 = vld [vmem:[%s4097_s0 + $0x38] sm:$0xff]  ;;  %v43_v19 = vld [vmem:[%s4097_s0 + $0x40] sm:$0xff]  ;;  %v2792_v20 = vpack.c.bf16 %v435_v17, %v434_v16  ;;  %v436_v21 = vld [vmem:[%s4098_s4 + $0x30] sm:$0xff] }
   0x7   :  { %2785 = vmatprep.subr.bf16.mxu0 %v2784_v11  ;;  %2816 = vmatprep.subr.bf16.mxu1 %v2784_v11  ;;  %v437_v22 = vld [vmem:[%s4098_s4 + $0x38] sm:$0xff]  ;;  %v44_v23 = vld [vmem:[%s4097_s0 + $0x48] sm:$0xff]  ;;  %v45_v24 = vld [vmem:[%s4097_s0 + $0x50] sm:$0xff] }
   0x8   :  { %2555 = vmatmul.mubr.msk.f32.vlgmr.msra.gmra.mrb[0].mxu0 %vm76_vm0, %v36_v4  ;;  %2820 = vmatpush3.bf16.msra.mxu1 %v2784_v11  ;;  %v2796_v25 = vpack.c.bf16 %v437_v22, %v436_v21  ;;  %v46_v26 = vld [vmem:[%s4097_s0 + $0x58] sm:$0xff]  ;;  %v47_v27 = vld [vmem:[%s4097_s0 + $0x60] sm:$0xff]  ;;  %v48_v28 = vld [vmem:[%s4097_s0 + $0x68] sm:$0xff] }
   0x9   :  { %2557 = vmatprep.mubr.msk.f32.mxu0 %vm76_vm0, %v37_v5  ;;  %2787 = vmatpush3.bf16.msra.mxu0 %v2784_v11  ;;  %v49_v29 = vld [vmem:[%s4097_s0 + $0x70] sm:$0xff]  ;;  %v50_v30 = vld [vmem:[%s4097_s0 + $0x78] sm:$0xff]  ;;  %v51_v31 = vld [vmem:[%s4097_s0 + $0x80] sm:$0xff] }
   0xa   :  { %2789 = vmatprep.subr.bf16.mxu0 %v2788_v15  ;;  %2817 = vmatprep.subr.bf16.mxu1 %v2788_v15  ;;  %v52_v32 = vld [vmem:[%s4097_s0 + $0x88] sm:$0xff]  ;;  %v53_v33 = vld [vmem:[%s4097_s0 + $0x90] sm:$0xff]  ;;  %v54_v34 = vld [vmem:[%s4097_s0 + $0x98] sm:$0xff] }
   0xb   :  { %v55_v35 = vld [vmem:[%s4097_s0 + $0xa0] sm:$0xff]  ;;  %v56_v36 = vld [vmem:[%s4097_s0 + $0xa8] sm:$0xff]  ;;  %v57_v37 = vld [vmem:[%s4097_s0 + $0xb0] sm:$0xff] }
   0xc   :  { %2558 = vmatmul.mubr.msk.f32.gmra.mrb[2].mxu0 %vm76_vm0, %v38_v6  ;;  %2821 = vmatpush3.bf16.msra.mxu1 %v2788_v15  ;;  %v58_v38 = vld [vmem:[%s4097_s0 + $0xb8] sm:$0xff]  ;;  %v59_v39 = vld [vmem:[%s4097_s0 + $0xc0] sm:$0xff]  ;;  %v60_v40 = vld [vmem:[%s4097_s0 + $0xc8] sm:$0xff] }
   0xd   :  { %2560 = vmatprep.mubr.msk.f32.mxu0 %vm76_vm0, %v39_v7  ;;  %2791 = vmatpush3.bf16.msra.mxu0 %v2788_v15  ;;  %v61_v41 = vld [vmem:[%s4097_s0 + $0xd0] sm:$0xff]  ;;  %v62_v42 = vld [vmem:[%s4097_s0 + $0xd8] sm:$0xff]  ;;  %v63_v43 = vld [vmem:[%s4097_s0 + $0xe0] sm:$0xff] }
   0xe   :  { %2793 = vmatprep.subr.bf16.mxu0 %v2792_v20  ;;  %2818 = vmatprep.subr.bf16.mxu1 %v2792_v20  ;;  %v64_v44 = vld [vmem:[%s4097_s0 + $0xe8] sm:$0xff]  ;;  %v65_v45 = vld [vmem:[%s4097_s0 + $0xf0] sm:$0xff]  ;;  %v66_v46 = vld [vmem:[%s4097_s0 + $0xf8] sm:$0xff] }
   0xf   :  { %v3236_v47 = vld [vmem:[%s4099_s3] ss:$0 sm:$0xff] }
  0x10   :  { %2561 = vmatmul.mubr.msk.f32.gmra.mrb[4].mxu0 %vm76_vm0, %v40_v10  ;;  %2822 = vmatpush3.bf16.msra.mxu1 %v2792_v20 }
  0x11   :  { %2563 = vmatprep.mubr.msk.f32.mxu0 %vm76_vm0, %v41_v14  ;;  %2795 = vmatpush3.bf16.msra.mxu0 %v2792_v20 }
  0x12   :  { %2797 = vmatprep.subr.bf16.mxu0 %v2796_v25  ;;  %2819 = vmatprep.subr.bf16.mxu1 %v2796_v25 }
  0x14   :  { %2564 = vmatmul.mubr.msk.f32.gmra.mrb[6].mxu0 %vm76_vm0, %v42_v18  ;;  %2823 = vmatpush3.bf16.msra.mxu1 %v2796_v25 }
  0x15   :  { %2566 = vmatprep.mubr.msk.f32.mxu0 %vm76_vm0, %v43_v19  ;;  %2799 = vmatpush3.bf16.msra.mxu0 %v2796_v25 }
  0x18   :  { %2567 = vmatmul.mubr.msk.f32.gmra.mrb[8].mxu0 %vm76_vm0, %v44_v23 }
  0x19   :  { %2569 = vmatprep.mubr.msk.f32.mxu0 %vm76_vm0, %v45_v24 }
  0x1c   :  { %2570 = vmatmul.mubr.msk.f32.gmra.mrb[10].mxu0 %vm76_vm0, %v46_v26 }
  0x1d   :  { %2572 = vmatprep.mubr.msk.f32.mxu0 %vm76_vm0, %v47_v27 }
  0x20   :  { %2573 = vmatmul.mubr.msk.f32.gmra.mrb[12].mxu0 %vm76_vm0, %v48_v28 }
  0x21   :  { %2575 = vmatprep.mubr.msk.f32.mxu0 %vm76_vm0, %v49_v29 }
  0x24   :  { %2576 = vmatmul.mubr.msk.f32.gmra.mrb[14].mxu0 %vm76_vm0, %v50_v30 }
  0x25   :  { %2578 = vmatprep.mubr.msk.f32.mxu0 %vm76_vm0, %v51_v31 }
  0x28   :  { %2579 = vmatmul.mubr.msk.f32.gmra.mrb[16].mxu0 %vm76_vm0, %v52_v32 }
  0x29   :  { %2581 = vmatprep.mubr.msk.f32.mxu0 %vm76_vm0, %v53_v33 }
  0x2c   :  { %2582 = vmatmul.mubr.msk.f32.gmra.mrb[18].mxu0 %vm76_vm0, %v54_v34 }
  0x2d   :  { %2584 = vmatprep.mubr.msk.f32.mxu0 %vm76_vm0, %v55_v35 }
  0x30   :  { %2585 = vmatmul.mubr.msk.f32.gmra.mrb[20].mxu0 %vm76_vm0, %v56_v36 }
  0x31   :  { %2587 = vmatprep.mubr.msk.f32.mxu0 %vm76_vm0, %v57_v37 }
  0x34   :  { %2588 = vmatmul.mubr.msk.f32.gmra.mrb[22].mxu0 %vm76_vm0, %v58_v38 }
  0x35   :  { %2590 = vmatprep.mubr.msk.f32.mxu0 %vm76_vm0, %v59_v39 }
  0x38   :  { %2591 = vmatmul.mubr.msk.f32.gmra.mrb[24].mxu0 %vm76_vm0, %v60_v40 }
  0x39   :  { %2593 = vmatprep.mubr.msk.f32.mxu0 %vm76_vm0, %v61_v41 }
  0x3c   :  { %2594 = vmatmul.mubr.msk.f32.gmra.mrb[26].mxu0 %vm76_vm0, %v62_v42 }
  0x3d   :  { %2596 = vmatprep.mubr.msk.f32.mxu0 %vm76_vm0, %v63_v43 }
  0x40   :  { %2597 = vmatmul.mubr.msk.f32.gmra.mrb[28].mxu0 %vm76_vm0, %v64_v44 }
  0x41   :  { %2599 = vmatprep.mubr.msk.f32.mxu0 %vm76_vm0, %v65_v45 }
  0x44   :  { %2600 = vmatmul.mubr.msk.f32.gmra.mrb[30].mxu0 %vm76_vm0, %v66_v46 }
  0xdb   :  { %v2556_v48 = vpop.f32.mrb[0].mxu0 }
  0xdc   :  { %v245_v49 = vadd.f32 %v2556_v48, %v3236_v47  ;;  %v239_v50 = vpop.f32.mrb[1].mxu0 }
  0xdd   :  { %v240_v51 = vadd.f32 %v3236_v47, %v239_v50 }
  0xde   :  { %v399_v54 = vmax.f32 %v245_v49, 0.0 }
  0xdf   :  { %v398_v52 = vmax.f32 %v240_v51, 0.0  ;;  %v2559_v53 = vpop.f32.mrb[2].mxu0 }
  0xe0   :  { %v255_v55 = vadd.f32 %v2559_v53, %v3236_v47  ;;  %v249_v56 = vpop.f32.mrb[3].mxu0 }
  0xe1   :  { %v250_v57 = vadd.f32 %v3236_v47, %v249_v56  ;;  %2618 = vmatprep.mubr.msk.f32.mxu0 %vm445_vm1, %v398_v52 }
  0xe2   :  { %2619 = vmatmul.mubr.msk.f32.vlgmr.msra.gmra.mrb[32].mxu0 %vm445_vm1, %v399_v54  ;;  %v401_v60 = vmax.f32 %v255_v55, 0.0 }
  0xe3   :  { %v400_v58 = vmax.f32 %v250_v57, 0.0  ;;  %v2562_v59 = vpop.f32.mrb[4].mxu0 }
  0xe4   :  { %v265_v61 = vadd.f32 %v2562_v59, %v3236_v47  ;;  %v259_v62 = vpop.f32.mrb[5].mxu0 }
  0xe5   :  { %v260_v63 = vadd.f32 %v3236_v47, %v259_v62  ;;  %2621 = vmatprep.mubr.msk.f32.mxu1 %vm445_vm1, %v400_v58 }
  0xe6   :  { %v403_v0 = vmax.f32 %v265_v61, 0.0  ;;  %2622 = vmatmul.mubr.msk.f32.vlgmr.msra.gmra.mrb[0].mxu1 %vm445_vm1, %v401_v60 }
  0xe7   :  { %v402_v1 = vmax.f32 %v260_v63, 0.0  ;;  %v2565_v2 = vpop.f32.mrb[6].mxu0 }
  0xe8   :  { %v275_v3 = vadd.f32 %v2565_v2, %v3236_v47  ;;  %v269_v4 = vpop.f32.mrb[7].mxu0 }
  0xe9   :  { %v270_v5 = vadd.f32 %v3236_v47, %v269_v4  ;;  %2624 = vmatprep.mubr.msk.f32.mxu1 %vm445_vm1, %v402_v1 }
  0xea   :  { %v405_v6 = vmax.f32 %v275_v3, 0.0  ;;  %2625 = vmatmul.mubr.msk.f32.gmra.mrb[2].mxu1 %vm445_vm1, %v403_v0 }
  0xeb   :  { %v404_v7 = vmax.f32 %v270_v5, 0.0  ;;  %v2568_v8 = vpop.f32.mrb[8].mxu0 }
  0xec   :  { %v285_v9 = vadd.f32 %v2568_v8, %v3236_v47  ;;  %v279_v10 = vpop.f32.mrb[9].mxu0 }
  0xed   :  { %v280_v11 = vadd.f32 %v3236_v47, %v279_v10  ;;  %2627 = vmatprep.mubr.msk.f32.mxu1 %vm445_vm1, %v404_v7 }
  0xee   :  { %v407_v12 = vmax.f32 %v285_v9, 0.0  ;;  %2628 = vmatmul.mubr.msk.f32.gmra.mrb[4].mxu1 %vm445_vm1, %v405_v6 }
  0xef   :  { %v406_v13 = vmax.f32 %v280_v11, 0.0  ;;  %v2571_v14 = vpop.f32.mrb[10].mxu0 }
  0xf0   :  { %v295_v15 = vadd.f32 %v2571_v14, %v3236_v47  ;;  %v289_v16 = vpop.f32.mrb[11].mxu0 }
  0xf1   :  { %v290_v17 = vadd.f32 %v3236_v47, %v289_v16  ;;  %2630 = vmatprep.mubr.msk.f32.mxu1 %vm445_vm1, %v406_v13 }
  0xf2   :  { %v409_v18 = vmax.f32 %v295_v15, 0.0  ;;  %2631 = vmatmul.mubr.msk.f32.gmra.mrb[6].mxu1 %vm445_vm1, %v407_v12 }
  0xf3   :  { %v408_v19 = vmax.f32 %v290_v17, 0.0  ;;  %v2574_v20 = vpop.f32.mrb[12].mxu0  ;;  %v3305_v17 = vld [vmem:[%s4100_s5] ss:$0 sm:$0xff] }
  0xf4   :  { %v305_v21 = vadd.f32 %v2574_v20, %v3236_v47  ;;  %v299_v22 = vpop.f32.mrb[13].mxu0 }
  0xf5   :  { %v300_v23 = vadd.f32 %v3236_v47, %v299_v22  ;;  %2633 = vmatprep.mubr.msk.f32.mxu1 %vm445_vm1, %v408_v19 }
  0xf6   :  { %v411_v24 = vmax.f32 %v305_v21, 0.0  ;;  %2634 = vmatmul.mubr.msk.f32.gmra.mrb[8].mxu1 %vm445_vm1, %v409_v18 }
  0xf7   :  { %v410_v25 = vmax.f32 %v300_v23, 0.0  ;;  %v2577_v26 = vpop.f32.mrb[14].mxu0 }
  0xf8   :  { %v315_v27 = vadd.f32 %v2577_v26, %v3236_v47  ;;  %v309_v28 = vpop.f32.mrb[15].mxu0 }
  0xf9   :  { %v310_v29 = vadd.f32 %v3236_v47, %v309_v28  ;;  %2636 = vmatprep.mubr.msk.f32.mxu1 %vm445_vm1, %v410_v25 }
  0xfa   :  { %v413_v30 = vmax.f32 %v315_v27, 0.0  ;;  %2637 = vmatmul.mubr.msk.f32.gmra.mrb[10].mxu1 %vm445_vm1, %v411_v24 }
  0xfb   :  { %v412_v31 = vmax.f32 %v310_v29, 0.0  ;;  %v2580_v32 = vpop.f32.mrb[16].mxu0 }
  0xfc   :  { %v325_v33 = vadd.f32 %v2580_v32, %v3236_v47  ;;  %v319_v34 = vpop.f32.mrb[17].mxu0 }
  0xfd   :  { %v320_v35 = vadd.f32 %v3236_v47, %v319_v34  ;;  %2639 = vmatprep.mubr.msk.f32.mxu1 %vm445_vm1, %v412_v31  ;;  %v1087_v34 = vld [vmem:[%s4101_s6] sm:$0xff]  ;;  %s3018_s6 = smov 120  }
  0xfe   :  { %v415_v36 = vmax.f32 %v325_v33, 0.0  ;;  %2640 = vmatmul.mubr.msk.f32.gmra.mrb[12].mxu1 %vm445_vm1, %v413_v30  ;;  %2666 = vmatprep.subr.mxu0 %v1087_v34 }
  0xff   :  { %v414_v37 = vmax.f32 %v320_v35, 0.0  ;;  %v2583_v38 = vpop.f32.mrb[18].mxu0  ;;  %2667 = vmatpush3.msra.mxu0 %v1087_v34 }
 0x100   :  { %v335_v39 = vadd.f32 %v2583_v38, %v3236_v47  ;;  %v329_v40 = vpop.f32.mrb[19].mxu0 }
 0x101   :  { %v330_v41 = vadd.f32 %v3236_v47, %v329_v40  ;;  %2642 = vmatprep.mubr.msk.f32.mxu1 %vm445_vm1, %v414_v37 }
 0x102   :  { %v417_v42 = vmax.f32 %v335_v39, 0.0  ;;  %2643 = vmatmul.mubr.msk.f32.gmra.mrb[14].mxu1 %vm445_vm1, %v415_v36 }
 0x103   :  { %v416_v43 = vmax.f32 %v330_v41, 0.0  ;;  %v2586_v44 = vpop.f32.mrb[20].mxu0 }
 0x104   :  { %v345_v45 = vadd.f32 %v2586_v44, %v3236_v47  ;;  %v339_v46 = vpop.f32.mrb[21].mxu0 }
 0x105   :  { %v340_v48 = vadd.f32 %v3236_v47, %v339_v46  ;;  %2645 = vmatprep.mubr.msk.f32.mxu1 %vm445_vm1, %v416_v43 }
 0x106   :  { %v419_v49 = vmax.f32 %v345_v45, 0.0  ;;  %2646 = vmatmul.mubr.msk.f32.gmra.mrb[16].mxu1 %vm445_vm1, %v417_v42 }
 0x107   :  { %v418_v50 = vmax.f32 %v340_v48, 0.0  ;;  %v2589_v51 = vpop.f32.mrb[22].mxu0 }
 0x108   :  { %v355_v52 = vadd.f32 %v2589_v51, %v3236_v47  ;;  %v349_v53 = vpop.f32.mrb[23].mxu0 }
 0x109   :  { %v350_v54 = vadd.f32 %v3236_v47, %v349_v53  ;;  %2648 = vmatprep.mubr.msk.f32.mxu1 %vm445_vm1, %v418_v50 }
 0x10a   :  { %v421_v55 = vmax.f32 %v355_v52, 0.0  ;;  %2649 = vmatmul.mubr.msk.f32.gmra.mrb[18].mxu1 %vm445_vm1, %v419_v49 }
 0x10b   :  { %v420_v56 = vmax.f32 %v350_v54, 0.0  ;;  %v2592_v57 = vpop.f32.mrb[24].mxu0 }
 0x10c   :  { %v365_v58 = vadd.f32 %v2592_v57, %v3236_v47  ;;  %v359_v59 = vpop.f32.mrb[25].mxu0 }
 0x10d   :  { %v360_v60 = vadd.f32 %v3236_v47, %v359_v59  ;;  %2651 = vmatprep.mubr.msk.f32.mxu1 %vm445_vm1, %v420_v56 }
 0x10e   :  { %v423_v61 = vmax.f32 %v365_v58, 0.0  ;;  %2652 = vmatmul.mubr.msk.f32.gmra.mrb[20].mxu1 %vm445_vm1, %v421_v55 }
 0x10f   :  { %v422_v62 = vmax.f32 %v360_v60, 0.0  ;;  %v2595_v63 = vpop.f32.mrb[26].mxu0 }
 0x110   :  { %v375_v0 = vadd.f32 %v2595_v63, %v3236_v47  ;;  %v369_v1 = vpop.f32.mrb[27].mxu0 }
 0x111   :  { %v370_v2 = vadd.f32 %v3236_v47, %v369_v1  ;;  %2654 = vmatprep.mubr.msk.f32.mxu1 %vm445_vm1, %v422_v62 }
 0x112   :  { %v425_v3 = vmax.f32 %v375_v0, 0.0  ;;  %2655 = vmatmul.mubr.msk.f32.gmra.mrb[22].mxu1 %vm445_vm1, %v423_v61 }
 0x113   :  { %v424_v4 = vmax.f32 %v370_v2, 0.0  ;;  %v2598_v5 = vpop.f32.mrb[28].mxu0 }
 0x114   :  { %v385_v6 = vadd.f32 %v2598_v5, %v3236_v47  ;;  %v379_v7 = vpop.f32.mrb[29].mxu0 }
 0x115   :  { %v380_v8 = vadd.f32 %v3236_v47, %v379_v7  ;;  %2657 = vmatprep.mubr.msk.f32.mxu1 %vm445_vm1, %v424_v4 }
 0x116   :  { %v427_v9 = vmax.f32 %v385_v6, 0.0  ;;  %2658 = vmatmul.mubr.msk.f32.gmra.mrb[24].mxu1 %vm445_vm1, %v425_v3 }
 0x117   :  { %v426_v10 = vmax.f32 %v380_v8, 0.0  ;;  %v2601_v11 = vpop.f32.mrb[30].mxu0 }
 0x118   :  { %v395_v12 = vadd.f32 %v2601_v11, %v3236_v47  ;;  %v389_v13 = vpop.f32.mrb[31].mxu0 }
 0x119   :  { %v390_v14 = vadd.f32 %v3236_v47, %v389_v13  ;;  %2660 = vmatprep.mubr.msk.f32.mxu1 %vm445_vm1, %v426_v10 }
 0x11a   :  { %v429_v15 = vmax.f32 %v395_v12, 0.0  ;;  %2661 = vmatmul.mubr.msk.f32.gmra.mrb[26].mxu1 %vm445_vm1, %v427_v9 }
 0x11b   :  { %v428_v16 = vmax.f32 %v390_v14, 0.0 }
 0x11d   :  { %2663 = vmatprep.mubr.msk.f32.mxu1 %vm445_vm1, %v428_v16 }
 0x11e   :  { %2664 = vmatmul.mubr.msk.f32.gmra.mrb[28].mxu1 %vm445_vm1, %v429_v15 }
 0x1b5   :  { %v2620_v18 = vpop.f32.mrb[32].mxu0 }
 0x1b6   :  { %v3308_v19 = vadd.f32 %v2620_v18, %v3305_v17  ;;  %v608_v47 = vpop.f32.mrb[33].mxu0 }
 0x1b7   :  { %v3311_v20 = vadd.f32 %v3305_v17, %v608_v47 }
 0x1b8   :  { %v800_v21 = vmul.f32 0.5, %v3308_v19 }
 0x1b9   :  { %v799_v22 = vmul.f32 0.5, %v3311_v20  ;;  %v2623_v23 = vpop.f32.mrb[0].mxu1 }
 0x1ba   :  { %v3316_v24 = vadd.f32 %v2623_v23, %v3305_v17  ;;  %v618_v25 = vpop.f32.mrb[1].mxu1  ;;  %v833_v28 = vmul.f32 1.442695, %v800_v21 }
 0x1bb   :  { %v831_v26 = vmul.f32 1.442695, %v799_v22  ;;  %v3319_v27 = vadd.f32 %v3305_v17, %v618_v25 }
 0x1bc   :  { %v802_v29 = vmul.f32 0.5, %v3316_v24 }
 0x1bd   :  { %2826 = vpow2.f32 %v831_v26  ;;  %v801_v30 = vmul.f32 0.5, %v3319_v27  ;;  %v2626_v31 = vpop.f32.mrb[2].mxu1 }
 0x1be   :  { %v3324_v32 = vadd.f32 %v2626_v31, %v3305_v17  ;;  %v628_v33 = vpop.f32.mrb[3].mxu1  ;;  %2828 = vpow2.f32 %v833_v28  ;;  %v837_v37 = vmul.f32 1.442695, %v802_v29 }
 0x1bf   :  { %v835_v35 = vmul.f32 1.442695, %v801_v30  ;;  %v3330_v36 = vadd.f32 %v3305_v17, %v628_v33 }
 0x1c0   :  { %v804_v38 = vmul.f32 0.5, %v3324_v32 }
 0x1c1   :  { %2830 = vpow2.f32 %v835_v35  ;;  %v803_v39 = vmul.f32 0.5, %v3330_v36  ;;  %v2629_v40 = vpop.f32.mrb[4].mxu1 }
 0x1c2   :  { %v3335_v41 = vadd.f32 %v2629_v40, %v3305_v17  ;;  %v638_v42 = vpop.f32.mrb[5].mxu1  ;;  %2832 = vpow2.f32 %v837_v37  ;;  %v841_v45 = vmul.f32 1.442695, %v804_v38 }
 0x1c3   :  { %v839_v43 = vmul.f32 1.442695, %v803_v39  ;;  %v3338_v44 = vadd.f32 %v3305_v17, %v638_v42 }
 0x1c4   :  { %v806_v46 = vmul.f32 0.5, %v3335_v41 }
 0x1c5   :  { %2834 = vpow2.f32 %v839_v43  ;;  %v805_v48 = vmul.f32 0.5, %v3338_v44  ;;  %v2632_v49 = vpop.f32.mrb[6].mxu1 }
 0x1c6   :  { %v3343_v50 = vadd.f32 %v2632_v49, %v3305_v17  ;;  %v648_v51 = vpop.f32.mrb[7].mxu1  ;;  %2836 = vpow2.f32 %v841_v45  ;;  %v845_v55 = vmul.f32 1.442695, %v806_v46 }
 0x1c7   :  { %v2827_v52 = vpop.eup %2826  ;;  %v843_v53 = vmul.f32 1.442695, %v805_v48  ;;  %v3346_v54 = vadd.f32 %v3305_v17, %v648_v51 }
 0x1c8   :  { %v808_v56 = vmul.f32 0.5, %v3343_v50  ;;  %927 = vrot.lane.b32.xlu0 %v2827_v52, %s3018_s6  ;;  %v2829_v59 = vpop.eup %2828 }
 0x1c9   :  { %2838 = vpow2.f32 %v843_v53  ;;  %v807_v57 = vmul.f32 0.5, %v3346_v54  ;;  %v2635_v58 = vpop.f32.mrb[8].mxu1 }
 0x1ca   :  { %v3352_v60 = vadd.f32 %v2635_v58, %v3305_v17  ;;  %v658_v61 = vpop.f32.mrb[9].mxu1  ;;  %2840 = vpow2.f32 %v845_v55  ;;  %v849_v1 = vmul.f32 1.442695, %v808_v56 }
 0x1cb   :  { %v2831_v62 = vpop.eup %2830  ;;  %v847_v63 = vmul.f32 1.442695, %v807_v57  ;;  %v3355_v0 = vadd.f32 %v3305_v17, %v658_v61 }
 0x1cc   :  { %v810_v2 = vmul.f32 0.5, %v3352_v60  ;;  %931 = vrot.lane.b32.xlu1 %v2831_v62, %s3018_s6  ;;  %929 = vrot.lane.b32.xlu0 %v2829_v59, %s3018_s6  ;;  %v2833_v5 = vpop.eup %2832 }
 0x1cd   :  { %2842 = vpow2.f32 %v847_v63  ;;  %v809_v3 = vmul.f32 0.5, %v3355_v0  ;;  %v2638_v4 = vpop.f32.mrb[10].mxu1 }
 0x1ce   :  { %v3362_v6 = vadd.f32 %v2638_v4, %v3305_v17  ;;  %v668_v7 = vpop.f32.mrb[11].mxu1  ;;  %2844 = vpow2.f32 %v849_v1  ;;  %v853_v11 = vmul.f32 1.442695, %v810_v2 }
 0x1cf   :  { %v2835_v8 = vpop.eup %2834  ;;  %v851_v9 = vmul.f32 1.442695, %v809_v3  ;;  %v3365_v10 = vadd.f32 %v3305_v17, %v668_v7 }
 0x1d0   :  { %v812_v12 = vmul.f32 0.5, %v3362_v6  ;;  %933 = vrot.lane.b32.xlu1 %v2833_v5, %s3018_s6  ;;  %935 = vrot.lane.b32.xlu0 %v2835_v8, %s3018_s6  ;;  %v2837_v15 = vpop.eup %2836 }
 0x1d1   :  { %2846 = vpow2.f32 %v851_v9  ;;  %v811_v13 = vmul.f32 0.5, %v3365_v10  ;;  %v2641_v14 = vpop.f32.mrb[12].mxu1 }
 0x1d2   :  { %v3372_v16 = vadd.f32 %v2641_v14, %v3305_v17  ;;  %v678_v18 = vpop.f32.mrb[13].mxu1  ;;  %2848 = vpow2.f32 %v853_v11  ;;  %v857_v23 = vmul.f32 1.442695, %v812_v12 }
 0x1d3   :  { %v2839_v47 = vpop.eup %2838  ;;  %v855_v21 = vmul.f32 1.442695, %v811_v13  ;;  %v3375_v22 = vadd.f32 %v3305_v17, %v678_v18 }
 0x1d4   :  { %v814_v25 = vmul.f32 0.5, %v3372_v16  ;;  %937 = vrot.lane.b32.xlu1 %v2837_v15, %s3018_s6  ;;  %939 = vrot.lane.b32.xlu0 %v2839_v47, %s3018_s6  ;;  %v2841_v29 = vpop.eup %2840 }
 0x1d5   :  { %2850 = vpow2.f32 %v855_v21  ;;  %v813_v26 = vmul.f32 0.5, %v3375_v22  ;;  %v2644_v28 = vpop.f32.mrb[14].mxu1 }
 0x1d6   :  { %v3382_v30 = vadd.f32 %v2644_v28, %v3305_v17  ;;  %v688_v31 = vpop.f32.mrb[15].mxu1  ;;  %2852 = vpow2.f32 %v857_v23  ;;  %v861_v37 = vmul.f32 1.442695, %v814_v25 }
 0x1d7   :  { %v2843_v33 = vpop.eup %2842  ;;  %v859_v34 = vmul.f32 1.442695, %v813_v26  ;;  %v3385_v35 = vadd.f32 %v3305_v17, %v688_v31 }
 0x1d8   :  { %v816_v38 = vmul.f32 0.5, %v3382_v30  ;;  %941 = vrot.lane.b32.xlu1 %v2841_v29, %s3018_s6  ;;  %943 = vrot.lane.b32.xlu0 %v2843_v33, %s3018_s6  ;;  %v2845_v42 = vpop.eup %2844 }
 0x1d9   :  { %2854 = vpow2.f32 %v859_v34  ;;  %v815_v39 = vmul.f32 0.5, %v3385_v35  ;;  %v2647_v40 = vpop.f32.mrb[16].mxu1 }
 0x1da   :  { %v3392_v43 = vadd.f32 %v2647_v40, %v3305_v17  ;;  %v698_v45 = vpop.f32.mrb[17].mxu1  ;;  %2856 = vpow2.f32 %v861_v37  ;;  %v865_v51 = vmul.f32 1.442695, %v816_v38 }
 0x1db   :  { %v2847_v46 = vpop.eup %2846  ;;  %v863_v48 = vmul.f32 1.442695, %v815_v39  ;;  %v3395_v49 = vadd.f32 %v3305_v17, %v698_v45 }
 0x1dc   :  { %v818_v52 = vmul.f32 0.5, %v3392_v43  ;;  %945 = vrot.lane.b32.xlu1 %v2845_v42, %s3018_s6  ;;  %947 = vrot.lane.b32.xlu0 %v2847_v46, %s3018_s6  ;;  %v2849_v56 = vpop.eup %2848 }
 0x1dd   :  { %2858 = vpow2.f32 %v863_v48  ;;  %v817_v53 = vmul.f32 0.5, %v3395_v49  ;;  %v2650_v55 = vpop.f32.mrb[18].mxu1 }
 0x1de   :  { %v3402_v57 = vadd.f32 %v2650_v55, %v3305_v17  ;;  %v708_v58 = vpop.f32.mrb[19].mxu1  ;;  %2860 = vpow2.f32 %v865_v51  ;;  %v869_v63 = vmul.f32 1.442695, %v818_v52 }
 0x1df   :  { %v2851_v59 = vpop.eup %2850  ;;  %v867_v61 = vmul.f32 1.442695, %v817_v53  ;;  %v3405_v62 = vadd.f32 %v3305_v17, %v708_v58 }
 0x1e0   :  { %v820_v1 = vmul.f32 0.5, %v3402_v57  ;;  %949 = vrot.lane.b32.xlu1 %v2849_v56, %s3018_s6  ;;  %951 = vrot.lane.b32.xlu0 %v2851_v59, %s3018_s6  ;;  %v2853_v4 = vpop.eup %2852 }
 0x1e1   :  { %2862 = vpow2.f32 %v867_v61  ;;  %v819_v2 = vmul.f32 0.5, %v3405_v62  ;;  %v2653_v3 = vpop.f32.mrb[20].mxu1 }
 0x1e2   :  { %v3412_v5 = vadd.f32 %v2653_v3, %v3305_v17  ;;  %v718_v7 = vpop.f32.mrb[21].mxu1  ;;  %2864 = vpow2.f32 %v869_v63  ;;  %v873_v12 = vmul.f32 1.442695, %v820_v1 }
 0x1e3   :  { %v2855_v8 = vpop.eup %2854  ;;  %v871_v9 = vmul.f32 1.442695, %v819_v2  ;;  %v3415_v11 = vadd.f32 %v3305_v17, %v718_v7 }
 0x1e4   :  { %v822_v13 = vmul.f32 0.5, %v3412_v5  ;;  %953 = vrot.lane.b32.xlu1 %v2853_v4, %s3018_s6  ;;  %955 = vrot.lane.b32.xlu0 %v2855_v8, %s3018_s6  ;;  %v2857_v18 = vpop.eup %2856 }
 0x1e5   :  { %2866 = vpow2.f32 %v871_v9  ;;  %v821_v14 = vmul.f32 0.5, %v3415_v11  ;;  %v2656_v15 = vpop.f32.mrb[22].mxu1 }
 0x1e6   :  { %v3422_v47 = vadd.f32 %v2656_v15, %v3305_v17  ;;  %v728_v21 = vpop.f32.mrb[23].mxu1  ;;  %2868 = vpow2.f32 %v873_v12  ;;  %v877_v28 = vmul.f32 1.442695, %v822_v13 }
 0x1e7   :  { %v2859_v23 = vpop.eup %2858  ;;  %v875_v25 = vmul.f32 1.442695, %v821_v14  ;;  %v3425_v26 = vadd.f32 %v3305_v17, %v728_v21 }
 0x1e8   :  { %v824_v29 = vmul.f32 0.5, %v3422_v47  ;;  %957 = vrot.lane.b32.xlu1 %v2857_v18, %s3018_s6  ;;  %959 = vrot.lane.b32.xlu0 %v2859_v23, %s3018_s6  ;;  %v2861_v34 = vpop.eup %2860 }
 0x1e9   :  { %2870 = vpow2.f32 %v875_v25  ;;  %v823_v31 = vmul.f32 0.5, %v3425_v26  ;;  %v2659_v33 = vpop.f32.mrb[24].mxu1 }
 0x1ea   :  { %v3432_v37 = vadd.f32 %v2659_v33, %v3305_v17  ;;  %v738_v38 = vpop.f32.mrb[25].mxu1  ;;  %2872 = vpow2.f32 %v877_v28  ;;  %v881_v45 = vmul.f32 1.442695, %v824_v29 }
 0x1eb   :  { %v2863_v39 = vpop.eup %2862  ;;  %v879_v40 = vmul.f32 1.442695, %v823_v31  ;;  %v3435_v42 = vadd.f32 %v3305_v17, %v738_v38 }
 0x1ec   :  { %v826_v46 = vmul.f32 0.5, %v3432_v37  ;;  %961 = vrot.lane.b32.xlu1 %v2861_v34, %s3018_s6  ;;  %963 = vrot.lane.b32.xlu0 %v2863_v39, %s3018_s6  ;;  %v2865_v52 = vpop.eup %2864  ;;  %v767_v39 = vld [vmem:[%s4102_s1] sm:$0xff] }
 0x1ed   :  { %2874 = vpow2.f32 %v879_v40  ;;  %v825_v48 = vmul.f32 0.5, %v3435_v42  ;;  %v2662_v51 = vpop.f32.mrb[26].mxu1 }
 0x1ee   :  { %v3442_v53 = vadd.f32 %v2662_v51, %v3305_v17  ;;  %v748_v55 = vpop.f32.mrb[27].mxu1  ;;  %2876 = vpow2.f32 %v881_v45  ;;  %v885_v61 = vmul.f32 1.442695, %v826_v46  ;;  %v769_v45 = vld [vmem:[%s4102_s1 + $0x10] sm:$0xff]  ;;  %v1450_v51 = vld [vmem:[%s4103_s8 + $0x8] sm:$0xff] }
 0x1ef   :  { %v2867_v56 = vpop.eup %2866  ;;  %v883_v58 = vmul.f32 1.442695, %v825_v48  ;;  %v3445_v59 = vadd.f32 %v3305_v17, %v748_v55  ;;  %v1449_v48 = vld [vmem:[%s4103_s8] sm:$0xff]  ;;  %v768_v55 = vld [vmem:[%s4102_s1 + $0x8] sm:$0xff] }
 0x1f0   :  { %v828_v63 = vmul.f32 0.5, %v3442_v53  ;;  %965 = vrot.lane.b32.xlu1 %v2865_v52, %s3018_s6  ;;  %967 = vrot.lane.b32.xlu0 %v2867_v56, %s3018_s6  ;;  %v2869_v3 = vpop.eup %2868  ;;  %v1451_v52 = vld [vmem:[%s4103_s8 + $0x10] sm:$0xff]  ;;  %v2800_v56 = vpack.c.bf16 %v1450_v51, %v1449_v48 }
 0x1f1   :  { %2878 = vpow2.f32 %v883_v58  ;;  %v827_v1 = vmul.f32 0.5, %v3445_v59  ;;  %v2665_v2 = vpop.f32.mrb[28].mxu1  ;;  %v1452_v58 = vld [vmem:[%s4103_s8 + $0x18] sm:$0xff] }
 0x1f2   :  { %v3452_v4 = vadd.f32 %v2665_v2, %v3305_v17  ;;  %v758_v7 = vpop.f32.mrb[29].mxu1  ;;  %2880 = vpow2.f32 %v885_v61  ;;  %v889_v13 = vmul.f32 1.442695, %v828_v63  ;;  %v2804_v63 = vpack.c.bf16 %v1452_v58, %v1451_v52  ;;  %2801 = vmatprep.subr.bf16.mxu1 %v2800_v56  ;;  %v776_v58 = vld [vmem:[%s4102_s1 + $0x48] sm:$0xff] }
 0x1f3   :  { %v2871_v8 = vpop.eup %2870  ;;  %v887_v9 = vmul.f32 1.442695, %v827_v1  ;;  %v3455_v12 = vadd.f32 %v3305_v17, %v758_v7  ;;  %v1454_v7 = vld [vmem:[%s4103_s8 + $0x28] sm:$0xff]  ;;  %2803 = vmatpush3.bf16.msra.mxu1 %v2800_v56 }
 0x1f4   :  { %969 = vrot.lane.b32.xlu1 %v2869_v3, %s3018_s6  ;;  %971 = vrot.lane.b32.xlu0 %v2871_v8, %s3018_s6  ;;  %v830_v14 = vmul.f32 0.5, %v3452_v4  ;;  %v2873_v18 = vpop.eup %2872  ;;  %v1453_v3 = vld [vmem:[%s4103_s8 + $0x20] sm:$0xff] }
 0x1f5   :  { %2882 = vpow2.f32 %v887_v9  ;;  %v829_v15 = vmul.f32 0.5, %v3455_v12  ;;  %2805 = vmatprep.subr.bf16.mxu1 %v2804_v63 }
 0x1f6   :  { %2884 = vpow2.f32 %v889_v13  ;;  %v893_v17 = vmul.f32 1.442695, %v830_v14  ;;  %v771_v13 = vld [vmem:[%s4102_s1 + $0x20] sm:$0xff] }
 0x1f7   :  { %v2875_v21 = vpop.eup %2874  ;;  %v891_v23 = vmul.f32 1.442695, %v829_v15  ;;  %2807 = vmatpush3.bf16.msra.mxu1 %v2804_v63 }
 0x1f8   :  { %973 = vrot.lane.b32.xlu1 %v2873_v18, %s3018_s6  ;;  %975 = vrot.lane.b32.xlu0 %v2875_v21, %s3018_s6  ;;  %v2877_v25 = vpop.eup %2876  ;;  %v2808_v18 = vpack.c.bf16 %v1454_v7, %v1453_v3  ;;  %v778_v7 = vld [vmem:[%s4102_s1 + $0x58] sm:$0xff] }
 0x1f9   :  { %2886 = vpow2.f32 %v891_v23 }
 0x1fa   :  { %2888 = vpow2.f32 %v893_v17  ;;  %v1455_v17 = vld [vmem:[%s4103_s8 + $0x30] sm:$0xff]  ;;  %2809 = vmatprep.subr.bf16.mxu1 %v2808_v18 }
 0x1fb   :  { %v2879_v28 = vpop.eup %2878  ;;  %2811 = vmatpush3.bf16.msra.mxu1 %v2808_v18  ;;  %v781_v18 = vld [vmem:[%s4102_s1 + $0x70] sm:$0xff] }
 0x1fc   :  { %977 = vrot.lane.b32.xlu1 %v2877_v25, %s3018_s6  ;;  %979 = vrot.lane.b32.xlu0 %v2879_v28, %s3018_s6  ;;  %v2881_v29 = vpop.eup %2880  ;;  %v1456_v25 = vld [vmem:[%s4103_s8 + $0x38] sm:$0xff] }
 0x1ff   :  { %v2883_v31 = vpop.eup %2882 }
 0x200   :  { %981 = vrot.lane.b32.xlu1 %v2881_v29, %s3018_s6  ;;  %983 = vrot.lane.b32.xlu0 %v2883_v31, %s3018_s6  ;;  %v2885_v33 = vpop.eup %2884 }
 0x203   :  { %v2887_v34 = vpop.eup %2886 }
 0x204   :  { %985 = vrot.lane.b32.xlu1 %v2885_v33, %s3018_s6  ;;  %987 = vrot.lane.b32.xlu0 %v2887_v34, %s3018_s6  ;;  %v2889_v38 = vpop.eup %2888  ;;  %v2812_v34 = vpack.c.bf16 %v1456_v25, %v1455_v17 }
 0x206   :  { %2813 = vmatprep.subr.bf16.mxu1 %v2812_v34 }
 0x207   :  { %2815 = vmatpush3.bf16.msra.mxu1 %v2812_v34  ;;  %v784_v34 = vld [vmem:[%s4102_s1 + $0x88] sm:$0xff] }
 0x208   :  { %989 = vrot.lane.b32.xlu1 %v2889_v38, %s3018_s6  ;;  %2009 = vrot.lane.b32.xlu0 %v3311_v20, %s3019_s13 }
 0x20c   :  { %2011 = vrot.lane.b32.xlu1 %v3308_v19, %s3019_s13  ;;  %2013 = vrot.lane.b32.xlu0 %v3319_v27, %s3019_s13 }
 0x210   :  { %2015 = vrot.lane.b32.xlu1 %v3316_v24, %s3019_s13  ;;  %2017 = vrot.lane.b32.xlu0 %v3330_v36, %s3019_s13 }
 0x214   :  { %2019 = vrot.lane.b32.xlu1 %v3324_v32, %s3019_s13  ;;  %2021 = vrot.lane.b32.xlu0 %v3338_v44, %s3019_s13 }
 0x218   :  { %2023 = vrot.lane.b32.xlu1 %v3335_v41, %s3019_s13  ;;  %2025 = vrot.lane.b32.xlu0 %v3346_v54, %s3019_s13 }
 0x21c   :  { %2027 = vrot.lane.b32.xlu1 %v3343_v50, %s3019_s13  ;;  %2029 = vrot.lane.b32.xlu0 %v3355_v0, %s3019_s13 }
 0x220   :  { %2031 = vrot.lane.b32.xlu1 %v3352_v60, %s3019_s13  ;;  %2033 = vrot.lane.b32.xlu0 %v3365_v10, %s3019_s13 }
 0x224   :  { %2035 = vrot.lane.b32.xlu1 %v3362_v6, %s3019_s13  ;;  %2037 = vrot.lane.b32.xlu0 %v3375_v22, %s3019_s13 }
 0x228   :  { %2039 = vrot.lane.b32.xlu1 %v3372_v16, %s3019_s13  ;;  %2041 = vrot.lane.b32.xlu0 %v3385_v35, %s3019_s13 }
 0x22c   :  { %2043 = vrot.lane.b32.xlu1 %v3382_v30, %s3019_s13  ;;  %2045 = vrot.lane.b32.xlu0 %v3395_v49, %s3019_s13 }
 0x230   :  { %2047 = vrot.lane.b32.xlu1 %v3392_v43, %s3019_s13  ;;  %2049 = vrot.lane.b32.xlu0 %v3405_v62, %s3019_s13 }
 0x234   :  { %2051 = vrot.lane.b32.xlu1 %v3402_v57, %s3019_s13  ;;  %2053 = vrot.lane.b32.xlu0 %v3415_v11, %s3019_s13 }
 0x238   :  { %2055 = vrot.lane.b32.xlu1 %v3412_v5, %s3019_s13  ;;  %2057 = vrot.lane.b32.xlu0 %v3425_v26, %s3019_s13 }
 0x23a   :  { %v928_v40 = vpop.permute.xlu0 %927 }
 0x23b   :  { %v1023_v46 = vmul.f32 %v928_v40, %v767_v39 }
 0x23c   :  { %2059 = vrot.lane.b32.xlu1 %v3422_v47, %s3019_s13  ;;  %2061 = vrot.lane.b32.xlu0 %v3435_v42, %s3019_s13 }
 0x23d   :  { %v1055_v61 = vadd.f32 %v1023_v46, %v3311_v20  ;;  %v770_v20 = vld [vmem:[%s4102_s1 + $0x18] sm:$0xff] }
 0x23e   :  { %v932_v1 = vpop.permute.xlu1 %931  ;;  %v930_v2 = vpop.permute.xlu0 %929 }
 0x23f   :  { %v1025_v8 = vmul.f32 %v932_v1, %v769_v45  ;;  %v1024_v9 = vmul.f32 %v930_v2, %v768_v55  ;;  %2668 = vmatprep.mubr.msk.f32.mxu0 %vm1095_vm2, %v1055_v61 }
 0x240   :  { %2063 = vrot.lane.b32.xlu1 %v3432_v37, %s3019_s13  ;;  %2065 = vrot.lane.b32.xlu0 %v3445_v59, %s3019_s13 }
 0x241   :  { %v1057_v14 = vadd.f32 %v1025_v8, %v3319_v27  ;;  %v1056_v15 = vadd.f32 %v1024_v9, %v3308_v19  ;;  %v772_v19 = vld [vmem:[%s4102_s1 + $0x28] sm:$0xff]  ;;  %v773_v27 = vld [vmem:[%s4102_s1 + $0x30] sm:$0xff]  ;;  %v779_v8 = vld [vmem:[%s4102_s1 + $0x60] sm:$0xff] }
 0x242   :  { %v934_v21 = vpop.permute.xlu1 %933  ;;  %v936_v23 = vpop.permute.xlu0 %935 }
 0x243   :  { %v1026_v28 = vmul.f32 %v934_v21, %v770_v20  ;;  %v1027_v29 = vmul.f32 %v936_v23, %v771_v13  ;;  %2669 = vmatmul.mubr.msk.f32.vlgmr.msra.gmra.mrb[34].mxu0 %vm1095_vm2, %v1056_v15  ;;  %v780_v15 = vld [vmem:[%s4102_s1 + $0x68] sm:$0xff] }
 0x244   :  { %2067 = vrot.lane.b32.xlu1 %v3442_v53, %s3019_s13  ;;  %2069 = vrot.lane.b32.xlu0 %v3455_v12, %s3019_s13 }
 0x245   :  { %v1058_v31 = vadd.f32 %v1026_v28, %v3316_v24  ;;  %v1059_v33 = vadd.f32 %v1027_v29, %v3330_v36  ;;  %2671 = vmatprep.mubr.msk.f32.mxu0 %vm1095_vm2, %v1057_v14  ;;  %v774_v24 = vld [vmem:[%s4102_s1 + $0x38] sm:$0xff]  ;;  %v775_v36 = vld [vmem:[%s4102_s1 + $0x40] sm:$0xff] }
 0x246   :  { %v938_v38 = vpop.permute.xlu1 %937  ;;  %v940_v39 = vpop.permute.xlu0 %939  ;;  %v782_v28 = vld [vmem:[%s4102_s1 + $0x78] sm:$0xff]  ;;  %v783_v29 = vld [vmem:[%s4102_s1 + $0x80] sm:$0xff] }
 0x247   :  { %v1028_v40 = vmul.f32 %v938_v38, %v772_v19  ;;  %v1029_v45 = vmul.f32 %v940_v39, %v773_v27  ;;  %2672 = vmatmul.mubr.msk.f32.gmra.mrb[36].mxu0 %vm1095_vm2, %v1058_v31  ;;  %v785_v38 = vld [vmem:[%s4102_s1 + $0x90] sm:$0xff] }
 0x248   :  { %2071 = vrot.lane.b32.xlu1 %v3452_v4, %s3019_s13  ;;  %2674 = vmatprep.mubr.msk.f32.mxu0 %vm1095_vm2, %v1059_v33 }
 0x249   :  { %v1060_v46 = vadd.f32 %v1028_v40, %v3324_v32  ;;  %v1061_v48 = vadd.f32 %v1029_v45, %v3338_v44  ;;  %v777_v32 = vld [vmem:[%s4102_s1 + $0x50] sm:$0xff] }
 0x24a   :  { %v942_v51 = vpop.permute.xlu1 %941  ;;  %v944_v52 = vpop.permute.xlu0 %943 }
 0x24b   :  { %v1030_v55 = vmul.f32 %v942_v51, %v774_v24  ;;  %v1031_v56 = vmul.f32 %v944_v52, %v775_v36  ;;  %2675 = vmatmul.mubr.msk.f32.gmra.mrb[38].mxu0 %vm1095_vm2, %v1060_v46  ;;  %v786_v36 = vld [vmem:[%s4102_s1 + $0x98] sm:$0xff]  ;;  %v787_v46 = vld [vmem:[%s4102_s1 + $0xa0] sm:$0xff] }
 0x24c   :  { %2677 = vmatprep.mubr.msk.f32.mxu0 %vm1095_vm2, %v1061_v48 }
 0x24d   :  { %v1062_v44 = vadd.f32 %v1030_v55, %v3335_v41  ;;  %v1063_v61 = vadd.f32 %v1031_v56, %v3346_v54  ;;  %v788_v56 = vld [vmem:[%s4102_s1 + $0xa8] sm:$0xff] }
 0x24e   :  { %v946_v63 = vpop.permute.xlu1 %945  ;;  %v948_v1 = vpop.permute.xlu0 %947 }
 0x24f   :  { %v1032_v2 = vmul.f32 %v946_v63, %v776_v58  ;;  %v1033_v3 = vmul.f32 %v948_v1, %v777_v32  ;;  %2678 = vmatmul.mubr.msk.f32.gmra.mrb[40].mxu0 %vm1095_vm2, %v1062_v44  ;;  %v789_v58 = vld [vmem:[%s4102_s1 + $0xb0] sm:$0xff]  ;;  %v790_v1 = vld [vmem:[%s4102_s1 + $0xb8] sm:$0xff] }
 0x250   :  { %2680 = vmatprep.mubr.msk.f32.mxu0 %vm1095_vm2, %v1063_v61 }
 0x251   :  { %v1064_v41 = vadd.f32 %v1032_v2, %v3343_v50  ;;  %v1065_v54 = vadd.f32 %v1033_v3, %v3355_v0  ;;  %v791_v2 = vld [vmem:[%s4102_s1 + $0xc0] sm:$0xff] }
 0x252   :  { %v950_v9 = vpop.permute.xlu1 %949  ;;  %v952_v20 = vpop.permute.xlu0 %951 }
 0x253   :  { %v1034_v13 = vmul.f32 %v950_v9, %v778_v7  ;;  %v1035_v14 = vmul.f32 %v952_v20, %v779_v8  ;;  %2681 = vmatmul.mubr.msk.f32.gmra.mrb[42].mxu0 %vm1095_vm2, %v1064_v41  ;;  %v793_v9 = vld [vmem:[%s4102_s1 + $0xd0] sm:$0xff] }
 0x254   :  { %2683 = vmatprep.mubr.msk.f32.mxu0 %vm1095_vm2, %v1065_v54  ;;  %v792_v54 = vld [vmem:[%s4102_s1 + $0xc8] sm:$0xff] }
 0x255   :  { %v1066_v50 = vadd.f32 %v1034_v13, %v3352_v60  ;;  %v1067_v0 = vadd.f32 %v1035_v14, %v3365_v10 }
 0x256   :  { %v954_v21 = vpop.permute.xlu1 %953  ;;  %v956_v23 = vpop.permute.xlu0 %955 }
 0x257   :  { %v1036_v17 = vmul.f32 %v954_v21, %v780_v15  ;;  %v1037_v25 = vmul.f32 %v956_v23, %v781_v18  ;;  %2684 = vmatmul.mubr.msk.f32.gmra.mrb[44].mxu0 %vm1095_vm2, %v1066_v50  ;;  %v794_v18 = vld [vmem:[%s4102_s1 + $0xd8] sm:$0xff]  ;;  %v795_v50 = vld [vmem:[%s4102_s1 + $0xe0] sm:$0xff] }
 0x258   :  { %2686 = vmatprep.mubr.msk.f32.mxu0 %vm1095_vm2, %v1067_v0 }
 0x259   :  { %v1068_v60 = vadd.f32 %v1036_v17, %v3362_v6  ;;  %v1069_v10 = vadd.f32 %v1037_v25, %v3375_v22  ;;  %v796_v25 = vld [vmem:[%s4102_s1 + $0xe8] sm:$0xff] }
 0x25a   :  { %v958_v19 = vpop.permute.xlu1 %957  ;;  %v960_v27 = vpop.permute.xlu0 %959 }
 0x25b   :  { %v1038_v31 = vmul.f32 %v958_v19, %v782_v28  ;;  %v1039_v33 = vmul.f32 %v960_v27, %v783_v29  ;;  %2687 = vmatmul.mubr.msk.f32.gmra.mrb[46].mxu0 %vm1095_vm2, %v1068_v60  ;;  %v797_v28 = vld [vmem:[%s4102_s1 + $0xf0] sm:$0xff]  ;;  %v798_v27 = vld [vmem:[%s4102_s1 + $0xf8] sm:$0xff] }
 0x25c   :  { %2689 = vmatprep.mubr.msk.f32.mxu0 %vm1095_vm2, %v1069_v10 }
 0x25d   :  { %v1070_v6 = vadd.f32 %v1038_v31, %v3372_v16  ;;  %v1071_v22 = vadd.f32 %v1039_v33, %v3385_v35 }
 0x25e   :  { %v962_v39 = vpop.permute.xlu1 %961  ;;  %v964_v40 = vpop.permute.xlu0 %963 }
 0x25f   :  { %v1040_v45 = vmul.f32 %v962_v39, %v784_v34  ;;  %v1041_v24 = vmul.f32 %v964_v40, %v785_v38  ;;  %2690 = vmatmul.mubr.msk.f32.gmra.mrb[48].mxu0 %vm1095_vm2, %v1070_v6  ;;  %v3721_v38 = vld [vmem:[%s4104_s7] ss:$0 sm:$0xff] }
 0x260   :  { %2692 = vmatprep.mubr.msk.f32.mxu0 %vm1095_vm2, %v1071_v22 }
 0x261   :  { %v1072_v16 = vadd.f32 %v1040_v45, %v3382_v30  ;;  %v1073_v35 = vadd.f32 %v1041_v24, %v3395_v49 }
 0x262   :  { %v966_v48 = vpop.permute.xlu1 %965  ;;  %v968_v51 = vpop.permute.xlu0 %967 }
 0x263   :  { %v1042_v52 = vmul.f32 %v966_v48, %v786_v36  ;;  %v1043_v55 = vmul.f32 %v968_v51, %v787_v46  ;;  %2693 = vmatmul.mubr.msk.f32.gmra.mrb[50].mxu0 %vm1095_vm2, %v1072_v16 }
 0x264   :  { %2695 = vmatprep.mubr.msk.f32.mxu0 %vm1095_vm2, %v1073_v35 }
 0x265   :  { %v1074_v30 = vadd.f32 %v1042_v52, %v3392_v43  ;;  %v1075_v49 = vadd.f32 %v1043_v55, %v3405_v62 }
 0x266   :  { %v970_v32 = vpop.permute.xlu1 %969  ;;  %v972_v44 = vpop.permute.xlu0 %971 }
 0x267   :  { %v1044_v61 = vmul.f32 %v970_v32, %v788_v56  ;;  %v1045_v63 = vmul.f32 %v972_v44, %v789_v58  ;;  %2696 = vmatmul.mubr.msk.f32.gmra.mrb[52].mxu0 %vm1095_vm2, %v1074_v30 }
 0x268   :  { %2698 = vmatprep.mubr.msk.f32.mxu0 %vm1095_vm2, %v1075_v49 }
 0x269   :  { %v1076_v43 = vadd.f32 %v1044_v61, %v3402_v57  ;;  %v1077_v62 = vadd.f32 %v1045_v63, %v3415_v11 }
 0x26a   :  { %v974_v3 = vpop.permute.xlu1 %973  ;;  %v976_v7 = vpop.permute.xlu0 %975 }
 0x26b   :  { %v1046_v8 = vmul.f32 %v974_v3, %v790_v1  ;;  %v1047_v41 = vmul.f32 %v976_v7, %v791_v2  ;;  %2699 = vmatmul.mubr.msk.f32.gmra.mrb[54].mxu0 %vm1095_vm2, %v1076_v43 }
 0x26c   :  { %2701 = vmatprep.mubr.msk.f32.mxu0 %vm1095_vm2, %v1077_v62 }
 0x26d   :  { %v1078_v57 = vadd.f32 %v1046_v8, %v3412_v5  ;;  %v1079_v11 = vadd.f32 %v1047_v41, %v3425_v26 }
 0x26e   :  { %v978_v20 = vpop.permute.xlu1 %977  ;;  %v980_v13 = vpop.permute.xlu0 %979 }
 0x26f   :  { %v1048_v14 = vmul.f32 %v978_v20, %v792_v54  ;;  %v1049_v15 = vmul.f32 %v980_v13, %v793_v9  ;;  %2702 = vmatmul.mubr.msk.f32.gmra.mrb[56].mxu0 %vm1095_vm2, %v1078_v57 }
 0x270   :  { %2704 = vmatprep.mubr.msk.f32.mxu0 %vm1095_vm2, %v1079_v11 }
 0x271   :  { %v1080_v5 = vadd.f32 %v1048_v14, %v3422_v47  ;;  %v1081_v26 = vadd.f32 %v1049_v15, %v3435_v42 }
 0x272   :  { %v982_v0 = vpop.permute.xlu1 %981  ;;  %v984_v21 = vpop.permute.xlu0 %983 }
 0x273   :  { %v1050_v23 = vmul.f32 %v982_v0, %v794_v18  ;;  %v1051_v17 = vmul.f32 %v984_v21, %v795_v50  ;;  %2705 = vmatmul.mubr.msk.f32.gmra.mrb[58].mxu0 %vm1095_vm2, %v1080_v5 }
 0x274   :  { %2707 = vmatprep.mubr.msk.f32.mxu0 %vm1095_vm2, %v1081_v26 }
 0x275   :  { %v1082_v47 = vadd.f32 %v1050_v23, %v3432_v37  ;;  %v1083_v42 = vadd.f32 %v1051_v17, %v3445_v59 }
 0x276   :  { %v986_v29 = vpop.permute.xlu1 %985  ;;  %v988_v60 = vpop.permute.xlu0 %987 }
 0x277   :  { %v1052_v10 = vmul.f32 %v986_v29, %v796_v25  ;;  %v1053_v19 = vmul.f32 %v988_v60, %v797_v28  ;;  %2708 = vmatmul.mubr.msk.f32.gmra.mrb[60].mxu0 %vm1095_vm2, %v1082_v47 }
 0x278   :  { %2710 = vmatprep.mubr.msk.f32.mxu0 %vm1095_vm2, %v1083_v42 }
 0x279   :  { %v1084_v31 = vadd.f32 %v1052_v10, %v3442_v53  ;;  %v1085_v33 = vadd.f32 %v1053_v19, %v3455_v12 }
 0x27a   :  { %v990_v34 = vpop.permute.xlu1 %989 }
 0x27b   :  { %v1054_v37 = vmul.f32 %v990_v34, %v798_v27  ;;  %2711 = vmatmul.mubr.msk.f32.gmra.mrb[62].mxu0 %vm1095_vm2, %v1084_v31 }
 0x27c   :  { %2713 = vmatprep.mubr.msk.f32.mxu0 %vm1095_vm2, %v1085_v33 }
 0x27d   :  { %v1086_v59 = vadd.f32 %v1054_v37, %v3452_v4 }
 0x27f   :  { %2714 = vmatmul.mubr.msk.f32.gmra.mrb[64].mxu0 %vm1095_vm2, %v1086_v59 }
 0x316   :  { %v2670_v6 = vpop.f32.mrb[34].mxu0 }
 0x317   :  { %v1264_v53 = vadd.f32 %v2670_v6, %v3721_v38  ;;  %v1258_v22 = vpop.f32.mrb[35].mxu0 }
 0x318   :  { %v1259_v12 = vadd.f32 %v3721_v38, %v1258_v22 }
 0x319   :  { %v1418_v45 = vmax.f32 %v1264_v53, 0.0 }
 0x31a   :  { %v1417_v39 = vmax.f32 %v1259_v12, 0.0  ;;  %v2673_v40 = vpop.f32.mrb[36].mxu0 }
 0x31b   :  { %v1274_v24 = vadd.f32 %v2673_v40, %v3721_v38  ;;  %v1268_v36 = vpop.f32.mrb[37].mxu0 }
 0x31c   :  { %v1269_v4 = vadd.f32 %v3721_v38, %v1268_v36  ;;  %2732 = vmatprep.mubr.msk.f32.mxu1 %vm445_vm1, %v1417_v39 }
 0x31d   :  { %2733 = vmatmul.mubr.msk.f32.vlgmr.msra.gmra.mrb[30].mxu1 %vm445_vm1, %v1418_v45  ;;  %v1420_v35 = vmax.f32 %v1274_v24, 0.0 }
 0x31e   :  { %v1419_v46 = vmax.f32 %v1269_v4, 0.0  ;;  %v2676_v16 = vpop.f32.mrb[38].mxu0 }
 0x31f   :  { %v1284_v48 = vadd.f32 %v2676_v16, %v3721_v38  ;;  %v1278_v51 = vpop.f32.mrb[39].mxu0 }
 0x320   :  { %v1279_v52 = vadd.f32 %v3721_v38, %v1278_v51  ;;  %2735 = vmatprep.mubr.msk.f32.mxu1 %vm445_vm1, %v1419_v46 }
 0x321   :  { %2736 = vmatmul.mubr.msk.f32.gmra.mrb[32].mxu1 %vm445_vm1, %v1420_v35  ;;  %v1422_v58 = vmax.f32 %v1284_v48, 0.0 }
 0x322   :  { %v1421_v55 = vmax.f32 %v1279_v52, 0.0  ;;  %v2679_v56 = vpop.f32.mrb[40].mxu0 }
 0x323   :  { %v1294_v30 = vadd.f32 %v2679_v56, %v3721_v38  ;;  %v1288_v49 = vpop.f32.mrb[41].mxu0 }
 0x324   :  { %v1289_v32 = vadd.f32 %v3721_v38, %v1288_v49  ;;  %2738 = vmatprep.mubr.msk.f32.mxu1 %vm445_vm1, %v1421_v55 }
 0x325   :  { %2739 = vmatmul.mubr.msk.f32.gmra.mrb[34].mxu1 %vm445_vm1, %v1422_v58  ;;  %v1424_v63 = vmax.f32 %v1294_v30, 0.0 }
 0x326   :  { %v1423_v44 = vmax.f32 %v1289_v32, 0.0  ;;  %v2682_v61 = vpop.f32.mrb[42].mxu0 }
 0x327   :  { %v1304_v1 = vadd.f32 %v2682_v61, %v3721_v38  ;;  %v1298_v2 = vpop.f32.mrb[43].mxu0 }
 0x328   :  { %v1299_v43 = vadd.f32 %v3721_v38, %v1298_v2  ;;  %2741 = vmatprep.mubr.msk.f32.mxu1 %vm445_vm1, %v1423_v44 }
 0x329   :  { %2742 = vmatmul.mubr.msk.f32.gmra.mrb[36].mxu1 %vm445_vm1, %v1424_v63  ;;  %v1426_v7 = vmax.f32 %v1304_v1, 0.0 }
 0x32a   :  { %v1425_v62 = vmax.f32 %v1299_v43, 0.0  ;;  %v2685_v3 = vpop.f32.mrb[44].mxu0 }
 0x32b   :  { %v1314_v8 = vadd.f32 %v2685_v3, %v3721_v38  ;;  %v1308_v41 = vpop.f32.mrb[45].mxu0 }
 0x32c   :  { %v1309_v54 = vadd.f32 %v3721_v38, %v1308_v41  ;;  %2744 = vmatprep.mubr.msk.f32.mxu1 %vm445_vm1, %v1425_v62 }
 0x32d   :  { %2745 = vmatmul.mubr.msk.f32.gmra.mrb[38].mxu1 %vm445_vm1, %v1426_v7  ;;  %v1428_v11 = vmax.f32 %v1314_v8, 0.0 }
 0x32e   :  { %v1427_v9 = vmax.f32 %v1309_v54, 0.0  ;;  %v2688_v57 = vpop.f32.mrb[46].mxu0  ;;  %v3790_v54 = vld [vmem:[%s4105_s9] ss:$0 sm:$0xff] }
 0x32f   :  { %v1324_v20 = vadd.f32 %v2688_v57, %v3721_v38  ;;  %v1318_v13 = vpop.f32.mrb[47].mxu0 }
 0x330   :  { %v1319_v14 = vadd.f32 %v3721_v38, %v1318_v13  ;;  %2747 = vmatprep.mubr.msk.f32.mxu1 %vm445_vm1, %v1427_v9 }
 0x331   :  { %2748 = vmatmul.mubr.msk.f32.gmra.mrb[40].mxu1 %vm445_vm1, %v1428_v11  ;;  %v1430_v50 = vmax.f32 %v1324_v20, 0.0 }
 0x332   :  { %v1429_v15 = vmax.f32 %v1319_v14, 0.0  ;;  %v2691_v18 = vpop.f32.mrb[48].mxu0  ;;  %v3796_v14 = vpop.permute.xlu0 %2009 }
 0x333   :  { %v1334_v5 = vadd.f32 %v2691_v18, %v3721_v38  ;;  %v1328_v26 = vpop.f32.mrb[49].mxu0 }
 0x334   :  { %v1329_v0 = vadd.f32 %v3721_v38, %v1328_v26  ;;  %2750 = vmatprep.mubr.msk.f32.mxu1 %vm445_vm1, %v1429_v15 }
 0x335   :  { %2751 = vmatmul.mubr.msk.f32.gmra.mrb[42].mxu1 %vm445_vm1, %v1430_v50  ;;  %v1432_v17 = vmax.f32 %v1334_v5, 0.0 }
 0x336   :  { %v1431_v21 = vmax.f32 %v1329_v0, 0.0  ;;  %v2694_v23 = vpop.f32.mrb[50].mxu0 }
 0x337   :  { %v1344_v25 = vadd.f32 %v2694_v23, %v3721_v38  ;;  %v1338_v28 = vpop.f32.mrb[51].mxu0 }
 0x338   :  { %v1339_v47 = vadd.f32 %v3721_v38, %v1338_v28  ;;  %2753 = vmatprep.mubr.msk.f32.mxu1 %vm445_vm1, %v1431_v21 }
 0x339   :  { %2754 = vmatmul.mubr.msk.f32.gmra.mrb[44].mxu1 %vm445_vm1, %v1432_v17  ;;  %v1434_v60 = vmax.f32 %v1344_v25, 0.0 }
 0x33a   :  { %v1433_v42 = vmax.f32 %v1339_v47, 0.0  ;;  %v2697_v29 = vpop.f32.mrb[52].mxu0  ;;  %v3803_v47 = vpop.permute.xlu0 %2013 }
 0x33b   :  { %v1354_v10 = vadd.f32 %v2697_v29, %v3721_v38  ;;  %v1348_v19 = vpop.f32.mrb[53].mxu0 }
 0x33c   :  { %v1349_v27 = vadd.f32 %v3721_v38, %v1348_v19  ;;  %2756 = vmatprep.mubr.msk.f32.mxu1 %vm445_vm1, %v1433_v42 }
 0x33d   :  { %2757 = vmatmul.mubr.msk.f32.gmra.mrb[46].mxu1 %vm445_vm1, %v1434_v60  ;;  %v1436_v34 = vmax.f32 %v1354_v10, 0.0 }
 0x33e   :  { %v1435_v31 = vmax.f32 %v1349_v27, 0.0  ;;  %v2700_v33 = vpop.f32.mrb[54].mxu0 }
 0x33f   :  { %v1364_v37 = vadd.f32 %v2700_v33, %v3721_v38  ;;  %v1358_v59 = vpop.f32.mrb[55].mxu0 }
 0x340   :  { %v1359_v6 = vadd.f32 %v3721_v38, %v1358_v59  ;;  %2759 = vmatprep.mubr.msk.f32.mxu1 %vm445_vm1, %v1435_v31 }
 0x341   :  { %2760 = vmatmul.mubr.msk.f32.gmra.mrb[48].mxu1 %vm445_vm1, %v1436_v34  ;;  %v1438_v12 = vmax.f32 %v1364_v37, 0.0 }
 0x342   :  { %v1437_v53 = vmax.f32 %v1359_v6, 0.0  ;;  %v2703_v22 = vpop.f32.mrb[56].mxu0  ;;  %v3810_v6 = vpop.permute.xlu0 %2017 }
 0x343   :  { %v1374_v39 = vadd.f32 %v2703_v22, %v3721_v38  ;;  %v1368_v40 = vpop.f32.mrb[57].mxu0 }
 0x344   :  { %v1369_v45 = vadd.f32 %v3721_v38, %v1368_v40  ;;  %2762 = vmatprep.mubr.msk.f32.mxu1 %vm445_vm1, %v1437_v53 }
 0x345   :  { %2763 = vmatmul.mubr.msk.f32.gmra.mrb[50].mxu1 %vm445_vm1, %v1438_v12  ;;  %v1440_v4 = vmax.f32 %v1374_v39, 0.0 }
 0x346   :  { %v1439_v24 = vmax.f32 %v1369_v45, 0.0  ;;  %v2706_v36 = vpop.f32.mrb[58].mxu0 }
 0x347   :  { %v1384_v46 = vadd.f32 %v2706_v36, %v3721_v38  ;;  %v1378_v16 = vpop.f32.mrb[59].mxu0 }
 0x348   :  { %v1379_v35 = vadd.f32 %v3721_v38, %v1378_v16  ;;  %2765 = vmatprep.mubr.msk.f32.mxu1 %vm445_vm1, %v1439_v24 }
 0x349   :  { %2766 = vmatmul.mubr.msk.f32.gmra.mrb[52].mxu1 %vm445_vm1, %v1440_v4  ;;  %v1442_v52 = vmax.f32 %v1384_v46, 0.0 }
 0x34a   :  { %v1441_v48 = vmax.f32 %v1379_v35, 0.0  ;;  %v2709_v51 = vpop.f32.mrb[60].mxu0 }
 0x34b   :  { %v1394_v55 = vadd.f32 %v2709_v51, %v3721_v38  ;;  %v1388_v56 = vpop.f32.mrb[61].mxu0 }
 0x34c   :  { %v1389_v58 = vadd.f32 %v3721_v38, %v1388_v56  ;;  %2768 = vmatprep.mubr.msk.f32.mxu1 %vm445_vm1, %v1441_v48 }
 0x34d   :  { %2769 = vmatmul.mubr.msk.f32.gmra.mrb[54].mxu1 %vm445_vm1, %v1442_v52  ;;  %v1444_v32 = vmax.f32 %v1394_v55, 0.0 }
 0x34e   :  { %v1443_v30 = vmax.f32 %v1389_v58, 0.0  ;;  %v2712_v49 = vpop.f32.mrb[62].mxu0  ;;  %v3817_v58 = vpop.permute.xlu0 %2021 }
 0x34f   :  { %v1404_v44 = vadd.f32 %v2712_v49, %v3721_v38  ;;  %v1398_v61 = vpop.f32.mrb[63].mxu0 }
 0x350   :  { %v1399_v63 = vadd.f32 %v3721_v38, %v1398_v61  ;;  %2771 = vmatprep.mubr.msk.f32.mxu1 %vm445_vm1, %v1443_v30 }
 0x351   :  { %2772 = vmatmul.mubr.msk.f32.gmra.mrb[56].mxu1 %vm445_vm1, %v1444_v32  ;;  %v1446_v43 = vmax.f32 %v1404_v44, 0.0 }
 0x352   :  { %v1445_v1 = vmax.f32 %v1399_v63, 0.0  ;;  %v2715_v2 = vpop.f32.mrb[64].mxu0 }
 0x353   :  { %v1414_v62 = vadd.f32 %v2715_v2, %v3721_v38  ;;  %v1408_v3 = vpop.f32.mrb[65].mxu0 }
 0x354   :  { %v1409_v7 = vadd.f32 %v3721_v38, %v1408_v3  ;;  %2774 = vmatprep.mubr.msk.f32.mxu1 %vm445_vm1, %v1445_v1  ;;  %v3793_v38 = vpop.permute.xlu1 %2011 }
 0x355   :  { %2775 = vmatmul.mubr.msk.f32.gmra.mrb[58].mxu1 %vm445_vm1, %v1446_v43  ;;  %v1448_v41 = vmax.f32 %v1414_v62, 0.0 }
 0x356   :  { %v1447_v8 = vmax.f32 %v1409_v7, 0.0 }
 0x358   :  { %2777 = vmatprep.mubr.msk.f32.mxu1 %vm445_vm1, %v1447_v8  ;;  %v3800_v21 = vpop.permute.xlu1 %2015 }
 0x359   :  { %2778 = vmatmul.mubr.msk.f32.gmra.mrb[60].mxu1 %vm445_vm1, %v1448_v41 }
 0x35c   :  { %v3807_v31 = vpop.permute.xlu1 %2019 }
 0x360   :  { %v3814_v16 = vpop.permute.xlu1 %2023 }
 0x364   :  { %v3821_v3 = vpop.permute.xlu1 %2027 }
 0x3f0   :  { %v2734_v9 = vpop.f32.mrb[30].mxu1 }
 0x3f1   :  { %v1632_v57 = vadd.f32 %v2734_v9, %v3790_v54  ;;  %v1626_v11 = vpop.f32.mrb[31].mxu1 }
 0x3f2   :  { %v1627_v20 = vadd.f32 %v3790_v54, %v1626_v11 }
 0x3f3   :  { %v2372_v13 = vmul.f32 -1.442695, %v1632_v57  ;;  %v3824_v57 = vpop.permute.xlu0 %2025 }
 0x3f4   :  { %v2371_v15 = vmul.f32 -1.442695, %v1627_v20  ;;  %v2737_v18 = vpop.f32.mrb[32].mxu1 }
 0x3f5   :  { %2890 = vpow2.f32 %v2372_v13  ;;  %v1642_v50 = vadd.f32 %v2737_v18, %v3790_v54  ;;  %v1636_v5 = vpop.f32.mrb[33].mxu1 }
 0x3f6   :  { %2892 = vpow2.f32 %v2371_v15  ;;  %v1637_v26 = vadd.f32 %v3790_v54, %v1636_v5 }
 0x3f7   :  { %v2374_v0 = vmul.f32 -1.442695, %v1642_v50 }
 0x3f8   :  { %v2373_v23 = vmul.f32 -1.442695, %v1637_v26  ;;  %v2740_v17 = vpop.f32.mrb[34].mxu1 }
 0x3f9   :  { %2894 = vpow2.f32 %v2374_v0  ;;  %v1652_v25 = vadd.f32 %v2740_v17, %v3790_v54  ;;  %v1646_v28 = vpop.f32.mrb[35].mxu1 }
 0x3fa   :  { %2896 = vpow2.f32 %v2373_v23  ;;  %v1647_v42 = vadd.f32 %v3790_v54, %v1646_v28 }
 0x3fb   :  { %v2376_v29 = vmul.f32 -1.442695, %v1652_v25 }
 0x3fc   :  { %v2375_v60 = vmul.f32 -1.442695, %v1647_v42  ;;  %v2743_v10 = vpop.f32.mrb[36].mxu1 }
 0x3fd   :  { %2898 = vpow2.f32 %v2376_v29  ;;  %v1662_v19 = vadd.f32 %v2743_v10, %v3790_v54  ;;  %v1656_v27 = vpop.f32.mrb[37].mxu1  ;;  %v3837_v10 = vpop.permute.xlu1 %2031 }
 0x3fe   :  { %2900 = vpow2.f32 %v2375_v60  ;;  %v1657_v33 = vadd.f32 %v3790_v54, %v1656_v27 }
 0x3ff   :  { %v2891_v34 = vpop.eup %2890  ;;  %v2378_v37 = vmul.f32 -1.442695, %v1662_v19 }
 0x400   :  { %v2893_v59 = vpop.eup %2892  ;;  %v1882_v53 = vadd.f32 1.0, %v2891_v34  ;;  %v2377_v22 = vmul.f32 -1.442695, %v1657_v33  ;;  %v2746_v12 = vpop.f32.mrb[38].mxu1 }
 0x401   :  { %v1881_v39 = vadd.f32 1.0, %v2893_v59  ;;  %2902 = vpow2.f32 %v2378_v37  ;;  %v1672_v40 = vadd.f32 %v2746_v12, %v3790_v54  ;;  %v1666_v45 = vpop.f32.mrb[39].mxu1 }
 0x402   :  { %2904 = vrcp.f32 %v1882_v53  ;;  %v1667_v24 = vadd.f32 %v3790_v54, %v1666_v45  ;;  %v3848_v53 = vpop.permute.xlu0 %2029 }
 0x403   :  { %v2895_v36 = vpop.eup %2894  ;;  %2906 = vrcp.f32 %v1881_v39  ;;  %v2380_v4 = vmul.f32 -1.442695, %v1672_v40 }
 0x404   :  { %v2897_v46 = vpop.eup %2896  ;;  %v1884_v35 = vadd.f32 1.0, %v2895_v36  ;;  %2908 = vpow2.f32 %v2377_v22  ;;  %v2379_v48 = vmul.f32 -1.442695, %v1667_v24  ;;  %v2749_v51 = vpop.f32.mrb[40].mxu1 }
 0x405   :  { %v1883_v52 = vadd.f32 1.0, %v2897_v46  ;;  %2910 = vpow2.f32 %v2380_v4  ;;  %v1682_v55 = vadd.f32 %v2749_v51, %v3790_v54  ;;  %v1676_v56 = vpop.f32.mrb[41].mxu1 }
 0x406   :  { %2912 = vrcp.f32 %v1884_v35  ;;  %v1677_v30 = vadd.f32 %v3790_v54, %v1676_v56 }
 0x407   :  { %v2899_v49 = vpop.eup %2898  ;;  %2914 = vrcp.f32 %v1883_v52  ;;  %v2382_v32 = vmul.f32 -1.442695, %v1682_v55 }
 0x408   :  { %v2901_v44 = vpop.eup %2900  ;;  %v1886_v61 = vadd.f32 1.0, %v2899_v49  ;;  %2916 = vpow2.f32 %v2379_v48  ;;  %v2381_v63 = vmul.f32 -1.442695, %v1677_v30  ;;  %v2752_v1 = vpop.f32.mrb[42].mxu1 }
 0x409   :  { %v1885_v2 = vadd.f32 1.0, %v2901_v44  ;;  %2918 = vpow2.f32 %v2382_v32  ;;  %v1692_v43 = vadd.f32 %v2752_v1, %v3790_v54  ;;  %v1686_v62 = vpop.f32.mrb[43].mxu1  ;;  %v3869_v32 = vpop.permute.xlu1 %2035 }
 0x40a   :  { %2920 = vrcp.f32 %v1886_v61  ;;  %v1687_v7 = vadd.f32 %v3790_v54, %v1686_v62 }
 0x40b   :  { %v2903_v8 = vpop.eup %2902  ;;  %2922 = vrcp.f32 %v1885_v2  ;;  %v2384_v41 = vmul.f32 -1.442695, %v1692_v43 }
 0x40c   :  { %v2905_v9 = vpop.eup %2904  ;;  %v1888_v11 = vadd.f32 1.0, %v2903_v8  ;;  %2924 = vpow2.f32 %v2381_v63  ;;  %v2383_v20 = vmul.f32 -1.442695, %v1687_v7  ;;  %v2755_v13 = vpop.f32.mrb[44].mxu1 }
 0x40d   :  { %v2907_v15 = vpop.eup %2906  ;;  %v2106_v18 = vsel %vm76_vm0, %v2905_v9, %v3793_v38  ;;  %2926 = vpow2.f32 %v2384_v41  ;;  %v1702_v50 = vadd.f32 %v2755_v13, %v3790_v54  ;;  %v1696_v5 = vpop.f32.mrb[45].mxu1 }
 0x40e   :  { %v2909_v26 = vpop.eup %2908  ;;  %v2139_v0 = vsel %vm2137_vm3, %v2106_v18, %v3793_v38  ;;  %v2105_v23 = vsel %vm76_vm0, %v2907_v15, %v3796_v14  ;;  %2928 = vrcp.f32 %v1888_v11  ;;  %v1697_v17 = vadd.f32 %v3790_v54, %v1696_v5  ;;  %v3879_v8 = vpop.permute.xlu0 %2033 }
 0x40f   :  { %v2911_v25 = vpop.eup %2910  ;;  %v2172_v28 = vsel %vm2170_vm4, %v2139_v0, 0.0  ;;  %v2138_v42 = vsel %vm2137_vm3, %v2105_v23, %v3796_v14  ;;  %v1887_v29 = vadd.f32 1.0, %v2909_v26  ;;  %2930 = vpow2.f32 %v2383_v20 }
 0x410   :  { %v2913_v60 = vpop.eup %2912  ;;  %2204 = vst [vmem:[%s4106_s10 + $0x8] sm:$0xff] %v2172_v28  ;;  %v2171_v38 = vsel %vm2170_vm4, %v2138_v42, 0.0  ;;  %v1890_v19 = vadd.f32 1.0, %v2911_v25  ;;  %v2386_v27 = vmul.f32 -1.442695, %v1702_v50  ;;  %v2758_v37 = vpop.f32.mrb[46].mxu1 }
 0x411   :  { %v2385_v33 = vmul.f32 -1.442695, %v1697_v17  ;;  %v2915_v34 = vpop.eup %2914  ;;  %2203 = vst [vmem:[%s4106_s10] sm:$0xff] %v2171_v38  ;;  %v2108_v14 = vsel %vm76_vm0, %v2913_v60, %v3800_v21  ;;  %2932 = vrcp.f32 %v1887_v29  ;;  %v1712_v39 = vadd.f32 %v2758_v37, %v3790_v54  ;;  %v1706_v40 = vpop.f32.mrb[47].mxu1 }
 0x412   :  { %v2917_v59 = vpop.eup %2916  ;;  %v2141_v22 = vsel %vm2137_vm3, %v2108_v14, %v3800_v21  ;;  %v2107_v12 = vsel %vm76_vm0, %v2915_v34, %v3803_v47  ;;  %2934 = vrcp.f32 %v1890_v19  ;;  %v1707_v55 = vadd.f32 %v3790_v54, %v1706_v40  ;;  %v3895_v28 = vpop.permute.xlu1 %2039 }
 0x413   :  { %v2919_v45 = vpop.eup %2918  ;;  %v2174_v24 = vsel %vm2170_vm4, %v2141_v22, 0.0  ;;  %v2140_v36 = vsel %vm2137_vm3, %v2107_v12, %v3803_v47  ;;  %v1889_v4 = vadd.f32 1.0, %v2917_v59  ;;  %2936 = vpow2.f32 %v2386_v27  ;;  %v3906_v14 = vpop.permute.xlu0 %2037 }
 0x414   :  { %v2921_v46 = vpop.eup %2920  ;;  %2206 = vst [vmem:[%s4106_s10 + $0x18] sm:$0xff] %v2174_v24  ;;  %v2173_v21 = vsel %vm2170_vm4, %v2140_v36, 0.0  ;;  %v1892_v35 = vadd.f32 1.0, %v2919_v45  ;;  %2938 = vpow2.f32 %v2385_v33  ;;  %v2388_v48 = vmul.f32 -1.442695, %v1712_v39  ;;  %v2761_v51 = vpop.f32.mrb[48].mxu1 }
 0x415   :  { %v2923_v52 = vpop.eup %2922  ;;  %2205 = vst [vmem:[%s4106_s10 + $0x10] sm:$0xff] %v2173_v21  ;;  %v2110_v47 = vsel %vm76_vm0, %v2921_v46, %v3807_v31  ;;  %2940 = vrcp.f32 %v1889_v4  ;;  %v1722_v56 = vadd.f32 %v2761_v51, %v3790_v54  ;;  %v1716_v30 = vpop.f32.mrb[49].mxu1  ;;  %v2387_v9 = vmul.f32 -1.442695, %v1707_v55 }
 0x416   :  { %v2925_v49 = vpop.eup %2924  ;;  %v2143_v44 = vsel %vm2137_vm3, %v2110_v47, %v3807_v31  ;;  %v2109_v61 = vsel %vm76_vm0, %v2923_v52, %v3810_v6  ;;  %2942 = vrcp.f32 %v1892_v35  ;;  %v1717_v63 = vadd.f32 %v3790_v54, %v1716_v30  ;;  %v3926_v51 = vpop.permute.xlu1 %2043 }
 0x417   :  { %v2927_v1 = vpop.eup %2926  ;;  %v2176_v2 = vsel %vm2170_vm4, %v2143_v44, 0.0  ;;  %v2142_v43 = vsel %vm2137_vm3, %v2109_v61, %v3810_v6  ;;  %v1891_v62 = vadd.f32 1.0, %v2925_v49  ;;  %2944 = vpow2.f32 %v2388_v48  ;;  %v3936_v61 = vpop.permute.xlu0 %2041 }
 0x418   :  { %v2929_v7 = vpop.eup %2928  ;;  %2208 = vst [vmem:[%s4106_s10 + $0x28] sm:$0xff] %v2176_v2  ;;  %v2175_v31 = vsel %vm2170_vm4, %v2142_v43, 0.0  ;;  %v1894_v41 = vadd.f32 1.0, %v2927_v1  ;;  %v2390_v20 = vmul.f32 -1.442695, %v1722_v56  ;;  %v2764_v15 = vpop.f32.mrb[50].mxu1 }
 0x419   :  { %v2931_v11 = vpop.eup %2930  ;;  %2207 = vst [vmem:[%s4106_s10 + $0x20] sm:$0xff] %v2175_v31  ;;  %v2112_v6 = vsel %vm76_vm0, %v2929_v7, %v3814_v16  ;;  %2946 = vrcp.f32 %v1891_v62  ;;  %v2389_v13 = vmul.f32 -1.442695, %v1717_v63  ;;  %v1732_v5 = vadd.f32 %v2764_v15, %v3790_v54  ;;  %v1726_v26 = vpop.f32.mrb[51].mxu1 }
 0x41a   :  { %v2145_v18 = vsel %vm2137_vm3, %v2112_v6, %v3814_v16  ;;  %2948 = vrcp.f32 %v1894_v41  ;;  %v1893_v50 = vadd.f32 1.0, %v2931_v11  ;;  %v1727_v17 = vadd.f32 %v3790_v54, %v1726_v26 }
 0x41b   :  { %v2933_v0 = vpop.eup %2932  ;;  %v2178_v23 = vsel %vm2170_vm4, %v2145_v18, 0.0  ;;  %2950 = vpow2.f32 %v2387_v9  ;;  %v2392_v42 = vmul.f32 -1.442695, %v1732_v5  ;;  %v3958_v5 = vpop.permute.xlu1 %2047 }
 0x41c   :  { %v2935_v25 = vpop.eup %2934  ;;  %2210 = vst [vmem:[%s4106_s10 + $0x38] sm:$0xff] %v2178_v23  ;;  %v2111_v16 = vsel %vm76_vm0, %v2933_v0, %v3817_v58  ;;  %2952 = vrcp.f32 %v1893_v50  ;;  %v2767_v29 = vpop.f32.mrb[52].mxu1  ;;  %v2391_v27 = vmul.f32 -1.442695, %v1727_v17 }
 0x41d   :  { %v2937_v60 = vpop.eup %2936  ;;  %v2144_v38 = vsel %vm2137_vm3, %v2111_v16, %v3817_v58  ;;  %v2114_v19 = vsel %vm76_vm0, %v2935_v25, %v3821_v3  ;;  %2954 = vpow2.f32 %v2390_v20  ;;  %v1736_v33 = vpop.f32.mrb[53].mxu1  ;;  %v1742_v40 = vadd.f32 %v2767_v29, %v3790_v54 }
 0x41e   :  { %v2939_v34 = vpop.eup %2938  ;;  %v2177_v37 = vsel %vm2170_vm4, %v2144_v38, 0.0  ;;  %v2147_v59 = vsel %vm2137_vm3, %v2114_v19, %v3821_v3  ;;  %v1896_v22 = vadd.f32 1.0, %v2937_v60  ;;  %2956 = vpow2.f32 %v2389_v13  ;;  %v3967_v38 = vpop.permute.xlu0 %2045 }
 0x41f   :  { %v2941_v12 = vpop.eup %2940  ;;  %2209 = vst [vmem:[%s4106_s10 + $0x30] sm:$0xff] %v2177_v37  ;;  %v2180_v58 = vsel %vm2170_vm4, %v2147_v59, 0.0  ;;  %v1895_v39 = vadd.f32 1.0, %v2939_v34  ;;  %2958 = vpow2.f32 %v2392_v42  ;;  %v1737_v24 = vadd.f32 %v3790_v54, %v1736_v33 }
 0x420   :  { %v2943_v45 = vpop.eup %2942  ;;  %2212 = vst [vmem:[%s4106_s10 + $0x48] sm:$0xff] %v2180_v58  ;;  %v2113_v3 = vsel %vm76_vm0, %v2941_v12, %v3824_v57  ;;  %2960 = vrcp.f32 %v1896_v22  ;;  %v2770_v36 = vpop.f32.mrb[54].mxu1  ;;  %v2394_v35 = vmul.f32 -1.442695, %v1742_v40 }
 0x421   :  { %v2945_v4 = vpop.eup %2944  ;;  %v2146_v46 = vsel %vm2137_vm3, %v2113_v3, %v3824_v57  ;;  %v2116_v21 = vsel %vm76_vm0, %v2943_v45, %v3837_v10  ;;  %2962 = vrcp.f32 %v1895_v39  ;;  %v1746_v48 = vpop.f32.mrb[55].mxu1  ;;  %v2393_v30 = vmul.f32 -1.442695, %v1737_v24 }
 0x422   :  { %v2179_v52 = vsel %vm2170_vm4, %v2146_v46, 0.0  ;;  %v2149_v47 = vsel %vm2137_vm3, %v2116_v21, %v3837_v10  ;;  %v1898_v55 = vadd.f32 1.0, %v2945_v4  ;;  %2964 = vpow2.f32 %v2391_v27  ;;  %v2052_v46 = vpop.permute.xlu1 %2051 }
 0x423   :  { %v2947_v56 = vpop.eup %2946  ;;  %2211 = vst [vmem:[%s4106_s10 + $0x40] sm:$0xff] %v2179_v52  ;;  %v2182_v57 = vsel %vm2170_vm4, %v2149_v47, 0.0  ;;  %2966 = vpow2.f32 %v2394_v35  ;;  %v1752_v49 = vadd.f32 %v2770_v36, %v3790_v54  ;;  %v1747_v63 = vadd.f32 %v3790_v54, %v1746_v48 }
 0x424   :  { %v2949_v44 = vpop.eup %2948  ;;  %2214 = vst [vmem:[%s4106_s10 + $0x58] sm:$0xff] %v2182_v57  ;;  %v2115_v10 = vsel %vm76_vm0, %v2947_v56, %v3848_v53  ;;  %2968 = vrcp.f32 %v1898_v55  ;;  %v2773_v1 = vpop.f32.mrb[56].mxu1 }
 0x425   :  { %v2951_v2 = vpop.eup %2950  ;;  %v2148_v43 = vsel %vm2137_vm3, %v2115_v10, %v3848_v53  ;;  %v2118_v62 = vsel %vm76_vm0, %v2949_v44, %v3869_v32  ;;  %2970 = vpow2.f32 %v2393_v30  ;;  %v2396_v7 = vmul.f32 -1.442695, %v1752_v49  ;;  %v1756_v31 = vpop.f32.mrb[57].mxu1 }
 0x426   :  { %v2953_v41 = vpop.eup %2952  ;;  %v2181_v9 = vsel %vm2170_vm4, %v2148_v43, 0.0  ;;  %v2151_v11 = vsel %vm2137_vm3, %v2118_v62, %v3869_v32  ;;  %v1897_v6 = vadd.f32 1.0, %v2951_v2  ;;  %v2395_v20 = vmul.f32 -1.442695, %v1747_v63  ;;  %v2050_v55 = vpop.permute.xlu0 %2049 }
 0x427   :  { %v2955_v13 = vpop.eup %2954  ;;  %2213 = vst [vmem:[%s4106_s10 + $0x50] sm:$0xff] %v2181_v9  ;;  %v2184_v53 = vsel %vm2170_vm4, %v2151_v11, 0.0  ;;  %v2117_v15 = vsel %vm76_vm0, %v2953_v41, %v3879_v8  ;;  %2972 = vpow2.f32 %v2396_v7  ;;  %v1762_v18 = vadd.f32 %v2773_v1, %v3790_v54  ;;  %v2056_v43 = vpop.permute.xlu1 %2055 }
 0x428   :  { %v2957_v50 = vpop.eup %2956  ;;  %2216 = vst [vmem:[%s4106_s10 + $0x68] sm:$0xff] %v2184_v53  ;;  %v2150_v32 = vsel %vm2137_vm3, %v2117_v15, %v3879_v8  ;;  %2974 = vrcp.f32 %v1897_v6  ;;  %v1900_v26 = vadd.f32 1.0, %v2955_v13  ;;  %v1757_v0 = vadd.f32 %v3790_v54, %v1756_v31  ;;  %v2776_v23 = vpop.f32.mrb[58].mxu1 }
 0x429   :  { %v2959_v17 = vpop.eup %2958  ;;  %v2183_v25 = vsel %vm2170_vm4, %v2150_v32, 0.0  ;;  %v1899_v16 = vadd.f32 1.0, %v2957_v50  ;;  %2976 = vpow2.f32 %v2395_v20  ;;  %v2398_v42 = vmul.f32 -1.442695, %v1762_v18  ;;  %v1766_v29 = vpop.f32.mrb[59].mxu1 }
 0x42a   :  { %v2961_v60 = vpop.eup %2960  ;;  %2215 = vst [vmem:[%s4106_s10 + $0x60] sm:$0xff] %v2183_v25  ;;  %2978 = vrcp.f32 %v1900_v26  ;;  %v1902_v8 = vadd.f32 1.0, %v2959_v17  ;;  %v2397_v19 = vmul.f32 -1.442695, %v1757_v0  ;;  %v1772_v27 = vadd.f32 %v2776_v23, %v3790_v54  ;;  %v2054_v6 = vpop.permute.xlu0 %2053 }
 0x42b   :  { %v2963_v33 = vpop.eup %2962  ;;  %v2120_v34 = vsel %vm76_vm0, %v2961_v60, %v3895_v28  ;;  %2980 = vrcp.f32 %v1899_v16  ;;  %v1767_v37 = vadd.f32 %v3790_v54, %v1766_v29  ;;  %v2060_v16 = vpop.permute.xlu1 %2059 }
 0x42c   :  { %v2965_v59 = vpop.eup %2964  ;;  %v2153_v22 = vsel %vm2137_vm3, %v2120_v34, %v3895_v28  ;;  %v2119_v12 = vsel %vm76_vm0, %v2963_v33, %v3906_v14  ;;  %2982 = vrcp.f32 %v1902_v8  ;;  %v2400_v58 = vmul.f32 -1.442695, %v1772_v27  ;;  %v2779_v39 = vpop.f32.mrb[60].mxu1 }
 0x42d   :  { %v2967_v40 = vpop.eup %2966  ;;  %v2186_v45 = vsel %vm2170_vm4, %v2153_v22, 0.0  ;;  %v2152_v3 = vsel %vm2137_vm3, %v2119_v12, %v3906_v14  ;;  %v1901_v24 = vadd.f32 1.0, %v2965_v59  ;;  %2984 = vpow2.f32 %v2398_v42  ;;  %v1776_v36 = vpop.f32.mrb[61].mxu1 }
 0x42e   :  { %v2969_v4 = vpop.eup %2968  ;;  %2218 = vst [vmem:[%s4106_s10 + $0x78] sm:$0xff] %v2186_v45  ;;  %v2185_v28 = vsel %vm2170_vm4, %v2152_v3, 0.0  ;;  %v1904_v21 = vadd.f32 1.0, %v2967_v40  ;;  %2986 = vpow2.f32 %v2397_v19  ;;  %v2399_v35 = vmul.f32 -1.442695, %v1767_v37  ;;  %v2058_v19 = vpop.permute.xlu0 %2057 }
 0x42f   :  { %v2971_v48 = vpop.eup %2970  ;;  %2217 = vst [vmem:[%s4106_s10 + $0x70] sm:$0xff] %v2185_v28  ;;  %v2122_v14 = vsel %vm76_vm0, %v2969_v4, %v3926_v51  ;;  %2988 = vrcp.f32 %v1901_v24  ;;  %v1782_v52 = vadd.f32 %v2779_v39, %v3790_v54  ;;  %v1777_v47 = vadd.f32 %v3790_v54, %v1776_v36  ;;  %v2064_v36 = vpop.permute.xlu1 %2063 }
 0x430   :  { %v2155_v56 = vsel %vm2137_vm3, %v2122_v14, %v3926_v51  ;;  %2990 = vrcp.f32 %v1904_v21  ;;  %v1903_v57 = vadd.f32 1.0, %v2971_v48 }
 0x431   :  { %v2973_v30 = vpop.eup %2972  ;;  %v2188_v49 = vsel %vm2170_vm4, %v2155_v56, 0.0  ;;  %2992 = vpow2.f32 %v2400_v58  ;;  %v2402_v44 = vmul.f32 -1.442695, %v1782_v52  ;;  %v2401_v51 = vmul.f32 -1.442695, %v1777_v47 }
 0x432   :  { %v2975_v10 = vpop.eup %2974  ;;  %2220 = vst [vmem:[%s4106_s10 + $0x88] sm:$0xff] %v2188_v49  ;;  %2994 = vrcp.f32 %v1903_v57  ;;  %v1906_v63 = vadd.f32 1.0, %v2973_v30  ;;  %v2062_v48 = vpop.permute.xlu0 %2061 }
 0x433   :  { %v2977_v1 = vpop.eup %2976  ;;  %v2121_v54 = vsel %vm76_vm0, %v2975_v10, %v3936_v61  ;;  %2996 = vpow2.f32 %v2399_v35  ;;  %v2068_v30 = vpop.permute.xlu1 %2067 }
 0x434   :  { %v2979_v2 = vpop.eup %2978  ;;  %v2154_v62 = vsel %vm2137_vm3, %v2121_v54, %v3936_v61  ;;  %2998 = vrcp.f32 %v1906_v63  ;;  %v1905_v7 = vadd.f32 1.0, %v2977_v1 }
 0x435   :  { %v2981_v31 = vpop.eup %2980  ;;  %v2187_v41 = vsel %vm2170_vm4, %v2154_v62, 0.0  ;;  %v2124_v9 = vsel %vm76_vm0, %v2979_v2, %v3958_v5  ;;  %3000 = vpow2.f32 %v2402_v44 }
 0x436   :  { %v2983_v11 = vpop.eup %2982  ;;  %2219 = vst [vmem:[%s4106_s10 + $0x80] sm:$0xff] %v2187_v41  ;;  %v2157_v20 = vsel %vm2137_vm3, %v2124_v9, %v3958_v5  ;;  %v2123_v61 = vsel %vm76_vm0, %v2981_v31, %v3967_v38  ;;  %3002 = vrcp.f32 %v1905_v7  ;;  %v2066_v54 = vpop.permute.xlu0 %2065 }
 0x437   :  { %v2985_v13 = vpop.eup %2984  ;;  %v2190_v53 = vsel %vm2170_vm4, %v2157_v20, 0.0  ;;  %v2156_v15 = vsel %vm2137_vm3, %v2123_v61, %v3967_v38  ;;  %v2126_v18 = vsel %vm76_vm0, %v2983_v11, %v2052_v46  ;;  %3004 = vpow2.f32 %v2401_v51  ;;  %v2072_v9 = vpop.permute.xlu1 %2071 }
 0x438   :  { %v2987_v50 = vpop.eup %2986  ;;  %2222 = vst [vmem:[%s4106_s10 + $0x98] sm:$0xff] %v2190_v53  ;;  %v2189_v5 = vsel %vm2170_vm4, %v2156_v15, 0.0  ;;  %v2159_v32 = vsel %vm2137_vm3, %v2126_v18, %v2052_v46  ;;  %v1908_v26 = vadd.f32 1.0, %v2985_v13 }
 0x439   :  { %v2989_v0 = vpop.eup %2988  ;;  %2221 = vst [vmem:[%s4106_s10 + $0x90] sm:$0xff] %v2189_v5  ;;  %v2192_v23 = vsel %vm2170_vm4, %v2159_v32, 0.0  ;;  %v1907_v17 = vadd.f32 1.0, %v2987_v50 }
 0x43a   :  { %v2991_v25 = vpop.eup %2990  ;;  %2224 = vst [vmem:[%s4106_s10 + $0xa8] sm:$0xff] %v2192_v23  ;;  %v2125_v42 = vsel %vm76_vm0, %v2989_v0, %v2050_v55  ;;  %3006 = vrcp.f32 %v1908_v26  ;;  %v2070_v13 = vpop.permute.xlu0 %2069 }
 0x43b   :  { %v2993_v29 = vpop.eup %2992  ;;  %v2158_v60 = vsel %vm2137_vm3, %v2125_v42, %v2050_v55  ;;  %v2128_v38 = vsel %vm76_vm0, %v2991_v25, %v2056_v43  ;;  %3008 = vrcp.f32 %v1907_v17 }
 0x43c   :  { %v2995_v8 = vpop.eup %2994  ;;  %v2191_v27 = vsel %vm2170_vm4, %v2158_v60, 0.0  ;;  %v2161_v33 = vsel %vm2137_vm3, %v2128_v38, %v2056_v43  ;;  %v1910_v34 = vadd.f32 1.0, %v2993_v29 }
 0x43d   :  { %v2997_v37 = vpop.eup %2996  ;;  %2223 = vst [vmem:[%s4106_s10 + $0xa0] sm:$0xff] %v2191_v27  ;;  %v2194_v59 = vsel %vm2170_vm4, %v2161_v33, 0.0  ;;  %v2127_v22 = vsel %vm76_vm0, %v2995_v8, %v2054_v6 }
 0x43e   :  { %v2999_v12 = vpop.eup %2998  ;;  %2226 = vst [vmem:[%s4106_s10 + $0xb8] sm:$0xff] %v2194_v59  ;;  %v2160_v58 = vsel %vm2137_vm3, %v2127_v22, %v2054_v6  ;;  %3010 = vrcp.f32 %v1910_v34  ;;  %v1909_v39 = vadd.f32 1.0, %v2997_v37 }
 0x43f   :  { %v3001_v40 = vpop.eup %3000  ;;  %v2193_v45 = vsel %vm2170_vm4, %v2160_v58, 0.0  ;;  %v2130_v3 = vsel %vm76_vm0, %v2999_v12, %v2060_v16 }
 0x440   :  { %v3003_v24 = vpop.eup %3002  ;;  %2225 = vst [vmem:[%s4106_s10 + $0xb0] sm:$0xff] %v2193_v45  ;;  %v2163_v4 = vsel %vm2137_vm3, %v2130_v3, %v2060_v16  ;;  %3012 = vrcp.f32 %v1909_v39  ;;  %v1912_v46 = vadd.f32 1.0, %v3001_v40 }
 0x441   :  { %v3005_v28 = vpop.eup %3004  ;;  %v2196_v21 = vsel %vm2170_vm4, %v2163_v4, 0.0  ;;  %v2129_v35 = vsel %vm76_vm0, %v3003_v24, %v2058_v19 }
 0x442   :  { %2228 = vst [vmem:[%s4106_s10 + $0xc8] sm:$0xff] %v2196_v21  ;;  %v2162_v14 = vsel %vm2137_vm3, %v2129_v35, %v2058_v19  ;;  %3014 = vrcp.f32 %v1912_v46  ;;  %v1911_v52 = vadd.f32 1.0, %v3005_v28 }
 0x443   :  { %v2195_v47 = vsel %vm2170_vm4, %v2162_v14, 0.0 }
 0x444   :  { %v3007_v55 = vpop.eup %3006  ;;  %2227 = vst [vmem:[%s4106_s10 + $0xc0] sm:$0xff] %v2195_v47  ;;  %3016 = vrcp.f32 %v1911_v52 }
 0x445   :  { %v3009_v56 = vpop.eup %3008  ;;  %v2132_v57 = vsel %vm76_vm0, %v3007_v55, %v2064_v36 }
 0x446   :  { %v2165_v49 = vsel %vm2137_vm3, %v2132_v57, %v2064_v36  ;;  %v2131_v44 = vsel %vm76_vm0, %v3009_v56, %v2062_v48 }
 0x447   :  { %v2198_v10 = vsel %vm2170_vm4, %v2165_v49, 0.0  ;;  %v2164_v63 = vsel %vm2137_vm3, %v2131_v44, %v2062_v48 }
 0x448   :  { %v3011_v1 = vpop.eup %3010  ;;  %2230 = vst [vmem:[%s4106_s10 + $0xd8] sm:$0xff] %v2198_v10  ;;  %v2197_v51 = vsel %vm2170_vm4, %v2164_v63, 0.0 }
 0x449   :  { %2229 = vst [vmem:[%s4106_s10 + $0xd0] sm:$0xff] %v2197_v51  ;;  %v2134_v2 = vsel %vm76_vm0, %v3011_v1, %v2068_v30 }
 0x44a   :  { %v3013_v43 = vpop.eup %3012  ;;  %v2167_v62 = vsel %vm2137_vm3, %v2134_v2, %v2068_v30 }
 0x44b   :  { %v2200_v7 = vsel %vm2170_vm4, %v2167_v62, 0.0  ;;  %v2133_v31 = vsel %vm76_vm0, %v3013_v43, %v2066_v54 }
 0x44c   :  { %v3015_v41 = vpop.eup %3014  ;;  %2232 = vst [vmem:[%s4106_s10 + $0xe8] sm:$0xff] %v2200_v7  ;;  %v2166_v11 = vsel %vm2137_vm3, %v2133_v31, %v2066_v54 }
 0x44d   :  { %v2199_v6 = vsel %vm2170_vm4, %v2166_v11, 0.0  ;;  %v2136_v20 = vsel %vm76_vm0, %v3015_v41, %v2072_v9 }
 0x44e   :  { %v3017_v61 = vpop.eup %3016  ;;  %2231 = vst [vmem:[%s4106_s10 + $0xe0] sm:$0xff] %v2199_v6  ;;  %v2169_v53 = vsel %vm2137_vm3, %v2136_v20, %v2072_v9 }
 0x44f   :  { %v2202_v15 = vsel %vm2170_vm4, %v2169_v53, 0.0  ;;  %v2135_v18 = vsel %vm76_vm0, %v3017_v61, %v2070_v13 }
 0x450   :  { %2234 = vst [vmem:[%s4106_s10 + $0xf8] sm:$0xff] %v2202_v15  ;;  %v2168_v50 = vsel %vm2137_vm3, %v2135_v18, %v2070_v13 }
 0x451   :  { %v2201_v5 = vsel %vm2170_vm4, %v2168_v50, 0.0 }
 0x452   :  { %2233 = vst [vmem:[%s4106_s10 + $0xf0] sm:$0xff] %v2201_v5 }

</bundles_post_ra>
